<compile_context>
chip_gen: v6e
topology: v6e:2x2x1
jax: 0.10.0
libtpu: 0.0.40
codegen_flags: <defaults>
</compile_context>

<pallas_src>
import functools

import jax
import jax.numpy as jnp
from jax import lax
from jax.experimental import pallas as pl
from jax.experimental.pallas import tpu as pltpu


def gat_forward_kernel(x0_ref, bias_ref,
                       w_in_ref, b_in_ref,
                       w_gat_ref, a_l_ref, a_r_ref,
                       w_o1_ref, b_o1_ref,
                       w_o2_ref, b_o2_ref,
                       out_ref):
    x0 = x0_ref[0]            # (N, S) bf16 one-hot states for this snapshot
    bias = bias_ref[...]      # (N, N) f32 additive mask: 0 on edges, -1e9 off

    # ---- in_layer: Linear + ReLU -------------------------------------------
    x_in = jnp.dot(x0, w_in_ref[...], preferred_element_type=jnp.float32)
    x_in = jnp.maximum(x_in + b_in_ref[...], 0.0)                     # (N, H) f32

    # ---- gat_layer_1: dense single-head graph attention ---------------------
    h = jnp.dot(x_in.astype(jnp.bfloat16), w_gat_ref[...],
                preferred_element_type=jnp.float32)                   # (N, H) f32
    h_bf = h.astype(jnp.bfloat16)

    # left projection -> column (N, 1); right projection -> row (1, N) directly
    # (contraction over the hidden axis, so no XLU transpose is needed).
    e_l = jnp.dot(h_bf, a_l_ref[...],
                  preferred_element_type=jnp.float32)                 # (N, 1)
    e_r = lax.dot_general(a_r_ref[...], h_bf,
                          (((1,), (1,)), ((), ())),
                          preferred_element_type=jnp.float32)         # (1, N)

    e = e_l + e_r                                                     # (N, N)
    # LeakyReLU(0.2) == max(e, 0.2*e)  (slope < 1), then additive adjacency mask
    e = jnp.maximum(e, 0.2 * e) + bias
    e = e - jnp.max(e, axis=-1, keepdims=True)                        # stable softmax
    p = jnp.exp(e)
    # approx reciprocal -> EUP slot; attention weights feed a matmul so the
    # ~1e-4 relative error is immaterial.
    attn = p * pl.reciprocal(jnp.sum(p, axis=-1, keepdims=True), approx=True)

    x = jnp.dot(attn.astype(jnp.bfloat16), h_bf,
                preferred_element_type=jnp.float32)                   # (N, H)
    x = jnp.where(x > 0.0, x, jnp.exp(jnp.minimum(x, 0.0)) - 1.0)     # ELU

    # ---- out_layers: Linear + ReLU + Linear + softmax -----------------------
    o1 = jnp.dot(x.astype(jnp.bfloat16), w_o1_ref[...],
                 preferred_element_type=jnp.float32)
    o1 = jnp.maximum(o1 + b_o1_ref[...], 0.0)                         # (N, H)
    logits = jnp.dot(o1.astype(jnp.bfloat16), w_o2_ref[...],
                     preferred_element_type=jnp.float32) + b_o2_ref[...]
    logits = logits - jnp.max(logits, axis=-1, keepdims=True)
    pe = jnp.exp(logits)
    # exact reciprocal for the returned probabilities (rows must sum to 1).
    out_ref[0] = pe * pl.reciprocal(jnp.sum(pe, axis=-1, keepdims=True),
                                    approx=False)


def _pallas_gat_batched(x0, mask_bias, params):
    """x0: (B, N, S) bf16 states; mask_bias: (N, N) f32; params: dict."""
    B, N, S = x0.shape
    H = params["w_gat"].shape[0]
    # single-block attention: (N,N) f32 intermediates must fit VMEM comfortably
    assert N * N * 4 <= 24 * 1024 * 1024, "tile the attention for large N"

    const = lambda b: (0, 0)          # weights / adjacency: resident across grid
    grid_spec = pltpu.PrefetchScalarGridSpec(
        num_scalar_prefetch=0,
        grid=(B,),
        in_specs=[
            pl.BlockSpec((1, N, S), lambda b: (b, 0, 0)),   # x0 (per snapshot)
            pl.BlockSpec((N, N), const),                    # mask bias
            pl.BlockSpec((S, H), const),                    # w_in
            pl.BlockSpec((1, H), const),                    # b_in
            pl.BlockSpec((H, H), const),                    # w_gat
            pl.BlockSpec((H, 1), const),                    # a_l
            pl.BlockSpec((1, H), const),                    # a_r
            pl.BlockSpec((H, H), const),                    # w_o1
            pl.BlockSpec((1, H), const),                    # b_o1
            pl.BlockSpec((H, S), const),                    # w_o2
            pl.BlockSpec((1, S), const),                    # b_o2
        ],
        out_specs=pl.BlockSpec((1, N, S), lambda b: (b, 0, 0)),
    )

    flops = int(2 * B * N * (S * H + H * H + 2 * H + N * H + H * H + H * S))
    transcendentals = int(B * (N * N + N * H + N * S))
    bytes_accessed = int(
        x0.size * x0.dtype.itemsize
        + mask_bias.size * mask_bias.dtype.itemsize
        + sum(int(v.size) * v.dtype.itemsize for v in params.values())
        + B * N * S * 4)

    return pl.pallas_call(
        gat_forward_kernel,
        out_shape=jax.ShapeDtypeStruct((B, N, S), jnp.float32),
        grid_spec=grid_spec,
        compiler_params=pltpu.CompilerParams(
            dimension_semantics=("parallel",)),
        cost_estimate=pl.CostEstimate(flops=flops,
                                      transcendentals=transcendentals,
                                      bytes_accessed=bytes_accessed),
    )(x0, mask_bias,
      params["w_in"], params["b_in"],
      params["w_gat"], params["a_l"], params["a_r"],
      params["w_o1"], params["b_o1"],
      params["w_o2"], params["b_o2"])


@functools.partial(jax.jit, static_argnames=())
def graph_attention_forward(network, x0, y_ob, y_true, weight, params):
    """Mirrors GraphAttentionModel.forward(network, dynamics, x0, y_ob, y_true, weight)
    for a batch of B graph snapshots sharing one adjacency (B may be 1).

    `dynamics` is unused by the reference forward pass and is therefore omitted.
    Returns (x0, out, y_true, y_ob, weight).
    """
    x0_sq = jnp.squeeze(x0)
    y_ob_sq = jnp.squeeze(y_ob)
    y_true_sq = jnp.squeeze(y_true)
    weight_sq = jnp.squeeze(weight)

    # additive attention mask-bias computed once per call (0 on edges, -1e9 off)
    mask_bias = jnp.where(network > 0.0, 0.0, -1e9).astype(jnp.float32)

    x0_b = x0_sq if x0_sq.ndim == 3 else x0_sq[None]
    out = _pallas_gat_batched(x0_b.astype(jnp.bfloat16), mask_bias, params)
    if x0_sq.ndim == 2:
        out = out[0]
    return (x0_sq, out, y_true_sq, y_ob_sq, weight_sq)


def make_params(key, num_states, hidden):
    ks = jax.random.split(key, 6)
    scale = 0.1
    bf = jnp.bfloat16
    return {
        # matmul weights pre-cast to bf16 (MXU-native on v6e/v7x); biases f32.
        "w_in":  (scale * jax.random.normal(ks[0], (num_states, hidden))).astype(bf),
        "b_in":  jnp.zeros((1, hidden), jnp.float32),
        "w_gat": (scale * jax.random.normal(ks[1], (hidden, hidden))).astype(bf),
        "a_l":   (scale * jax.random.normal(ks[2], (hidden, 1))).astype(bf),
        "a_r":   (scale * jax.random.normal(ks[3], (1, hidden))).astype(bf),
        "w_o1":  (scale * jax.random.normal(ks[4], (hidden, hidden))).astype(bf),
        "b_o1":  jnp.zeros((1, hidden), jnp.float32),
        "w_o2":  (scale * jax.random.normal(ks[5], (hidden, num_states))).astype(bf),
        "b_o2":  jnp.zeros((1, num_states), jnp.float32),
    }


if __name__ == "__main__":
    key = jax.random.PRNGKey(0)
    k_adj, k_x0, k_yob, k_ytrue, k_w, k_par = jax.random.split(key, 6)

    B = 8            # graph snapshots batched into one pallas_call (grid=(B,))
    N = 128          # number of graph nodes
    S = 4            # number of dynamical states (e.g. UAU/SIR compartments)
    H = 32           # hidden width

    # dense adjacency with self-loops, shared across the batch of snapshots
    adj = (jax.random.uniform(k_adj, (N, N)) < 0.1).astype(jnp.float32)
    adj = jnp.maximum(adj, adj.T)
    adj = jnp.maximum(adj, jnp.eye(N, dtype=jnp.float32))

    # inputs carry a trailing singleton dim so the module's .squeeze() is exercised
    x0 = jax.nn.one_hot(jax.random.randint(k_x0, (B, N), 0, S), S,
                        dtype=jnp.float32)[..., None]            # (B, N, S, 1)
    y_ob = jax.nn.one_hot(jax.random.randint(k_yob, (B, N), 0, S), S,
                          dtype=jnp.float32)[..., None]          # (B, N, S, 1)
    y_true = jax.random.uniform(k_ytrue, (B, N, S, 1), jnp.float32)
    weight = jax.random.uniform(k_w, (B, N, 1), jnp.float32)

    params = make_params(k_par, S, H)

    x0_o, out, y_true_o, y_ob_o, weight_o = graph_attention_forward(
        adj, x0, y_ob, y_true, weight, params)
    jax.block_until_ready(out)

    assert x0_o.shape == (B, N, S)
    assert out.shape == (B, N, S)
    assert bool(jnp.all(jnp.isfinite(out)))
    # output rows are probability distributions
    assert bool(jnp.allclose(jnp.sum(out, axis=-1), 1.0, atol=1e-5))

    print("KERNEL_OK")
</pallas_src>

<mosaic_0001>
module attributes {stable_mosaic.version = 11 : i64} {
  func.func @gat_forward_kernel(%arg0: i32, %arg1: memref<1x128x4xbf16, #tpu.memory_space<vmem>>, %arg2: memref<128x128xf32, #tpu.memory_space<vmem>>, %arg3: memref<4x32xbf16, #tpu.memory_space<vmem>>, %arg4: memref<1x32xf32, #tpu.memory_space<vmem>>, %arg5: memref<32x32xbf16, #tpu.memory_space<vmem>>, %arg6: memref<32x1xbf16, #tpu.memory_space<vmem>>, %arg7: memref<1x32xbf16, #tpu.memory_space<vmem>>, %arg8: memref<32x32xbf16, #tpu.memory_space<vmem>>, %arg9: memref<1x32xf32, #tpu.memory_space<vmem>>, %arg10: memref<32x4xbf16, #tpu.memory_space<vmem>>, %arg11: memref<1x4xf32, #tpu.memory_space<vmem>>, %arg12: memref<1x128x4xf32, #tpu.memory_space<vmem>>) attributes {dimension_semantics = [#tpu.dimension_semantics<parallel>], iteration_bounds = array<i64: 8>, scalar_prefetch = 0 : i64, scratch_operands = 0 : i64, tpu.core_type = #tpu.core_type<tc>, window_params = [{transform_indices = @transform_0, window_bounds = array<i64: 1, 128, 4>}, {pipeline_mode = #tpu.pipeline_mode<synchronous>, transform_indices = @transform_1, window_bounds = array<i64: 128, 128>}, {pipeline_mode = #tpu.pipeline_mode<synchronous>, transform_indices = @transform_2, window_bounds = array<i64: 4, 32>}, {pipeline_mode = #tpu.pipeline_mode<synchronous>, transform_indices = @transform_3, window_bounds = array<i64: 1, 32>}, {pipeline_mode = #tpu.pipeline_mode<synchronous>, transform_indices = @transform_4, window_bounds = array<i64: 32, 32>}, {pipeline_mode = #tpu.pipeline_mode<synchronous>, transform_indices = @transform_5, window_bounds = array<i64: 32, 1>}, {pipeline_mode = #tpu.pipeline_mode<synchronous>, transform_indices = @transform_6, window_bounds = array<i64: 1, 32>}, {pipeline_mode = #tpu.pipeline_mode<synchronous>, transform_indices = @transform_7, window_bounds = array<i64: 32, 32>}, {pipeline_mode = #tpu.pipeline_mode<synchronous>, transform_indices = @transform_8, window_bounds = array<i64: 1, 32>}, {pipeline_mode = #tpu.pipeline_mode<synchronous>, transform_indices = @transform_9, window_bounds = array<i64: 32, 4>}, {pipeline_mode = #tpu.pipeline_mode<synchronous>, transform_indices = @transform_10, window_bounds = array<i64: 1, 4>}, {transform_indices = @transform_11, window_bounds = array<i64: 1, 128, 4>}]} {
    %c0 = arith.constant 0 : index
    %c0_0 = arith.constant 0 : index
    %c0_1 = arith.constant 0 : index
    %0 = vector.load %arg1[%c0, %c0_0, %c0_1] : memref<1x128x4xbf16, #tpu.memory_space<vmem>>, vector<1x128x4xbf16>
    %1 = vector.shape_cast %0 : vector<1x128x4xbf16> to vector<128x4xbf16>
    %c0_2 = arith.constant 0 : index
    %c0_3 = arith.constant 0 : index
    %2 = vector.load %arg2[%c0_2, %c0_3] : memref<128x128xf32, #tpu.memory_space<vmem>>, vector<128x128xf32>
    %c0_4 = arith.constant 0 : index
    %c0_5 = arith.constant 0 : index
    %3 = vector.load %arg3[%c0_4, %c0_5] : memref<4x32xbf16, #tpu.memory_space<vmem>>, vector<4x32xbf16>
    %cst = arith.constant dense<0.000000e+00> : vector<128x32xf32>
    %4 = tpu.matmul %1, %3, %cst {dimension_numbers = #tpu.dot_dimension_numbers<[1], [0], [0], [1], [0, 0, 1, 1], [], []>} : vector<128x4xbf16>, vector<4x32xbf16>, vector<128x32xf32> -> vector<128x32xf32>
    %c0_6 = arith.constant 0 : index
    %c0_7 = arith.constant 0 : index
    %5 = vector.load %arg4[%c0_6, %c0_7] : memref<1x32xf32, #tpu.memory_space<vmem>>, vector<1x32xf32>
    %6 = vector.broadcast %5 : vector<1x32xf32> to vector<128x32xf32>
    %7 = arith.addf %4, %6 : vector<128x32xf32>
    %cst_8 = arith.constant 0.000000e+00 : f32
    %8 = vector.broadcast %cst_8 : f32 to vector<128x32xf32>
    %9 = arith.maximumf %7, %8 : vector<128x32xf32>
    %10 = arith.truncf %9 : vector<128x32xf32> to vector<128x32xbf16>
    %c0_9 = arith.constant 0 : index
    %c0_10 = arith.constant 0 : index
    %11 = vector.load %arg5[%c0_9, %c0_10] : memref<32x32xbf16, #tpu.memory_space<vmem>>, vector<32x32xbf16>
    %cst_11 = arith.constant dense<0.000000e+00> : vector<128x32xf32>
    %12 = tpu.matmul %10, %11, %cst_11 {dimension_numbers = #tpu.dot_dimension_numbers<[1], [0], [0], [1], [0, 0, 1, 1], [], []>} : vector<128x32xbf16>, vector<32x32xbf16>, vector<128x32xf32> -> vector<128x32xf32>
    %13 = arith.truncf %12 : vector<128x32xf32> to vector<128x32xbf16>
    %c0_12 = arith.constant 0 : index
    %c0_13 = arith.constant 0 : index
    %14 = vector.load %arg6[%c0_12, %c0_13] : memref<32x1xbf16, #tpu.memory_space<vmem>>, vector<32x1xbf16>
    %cst_14 = arith.constant dense<0.000000e+00> : vector<128x1xf32>
    %15 = tpu.matmul %13, %14, %cst_14 {dimension_numbers = #tpu.dot_dimension_numbers<[1], [0], [0], [1], [0, 0, 1, 1], [], []>} : vector<128x32xbf16>, vector<32x1xbf16>, vector<128x1xf32> -> vector<128x1xf32>
    %c0_15 = arith.constant 0 : index
    %c0_16 = arith.constant 0 : index
    %16 = vector.load %arg7[%c0_15, %c0_16] : memref<1x32xbf16, #tpu.memory_space<vmem>>, vector<1x32xbf16>
    %cst_17 = arith.constant dense<0.000000e+00> : vector<1x128xf32>
    %17 = tpu.matmul %16, %13, %cst_17 {dimension_numbers = #tpu.dot_dimension_numbers<[1], [1], [0], [0], [0, 0, 1, 0], [], []>} : vector<1x32xbf16>, vector<128x32xbf16>, vector<1x128xf32> -> vector<1x128xf32>
    %18 = vector.broadcast %15 : vector<128x1xf32> to vector<128x128xf32>
    %19 = vector.broadcast %17 : vector<1x128xf32> to vector<128x128xf32>
    %20 = arith.addf %18, %19 : vector<128x128xf32>
    %cst_18 = arith.constant 2.000000e-01 : f32
    %21 = vector.broadcast %cst_18 : f32 to vector<128x128xf32>
    %22 = arith.mulf %21, %20 : vector<128x128xf32>
    %23 = arith.maximumf %20, %22 : vector<128x128xf32>
    %24 = arith.addf %23, %2 : vector<128x128xf32>
    %cst_19 = arith.constant dense<0xFF800000> : vector<128xf32>
    %25 = vector.multi_reduction <maximumf>, %24, %cst_19 [1] : vector<128x128xf32> to vector<128xf32>
    %26 = vector.shape_cast %25 : vector<128xf32> to vector<128x1xf32>
    %27 = vector.broadcast %26 : vector<128x1xf32> to vector<128x128xf32>
    %28 = arith.subf %24, %27 : vector<128x128xf32>
    %29 = math.exp %28 : vector<128x128xf32>
    %cst_20 = arith.constant dense<0.000000e+00> : vector<128xf32>
    %30 = vector.multi_reduction <add>, %29, %cst_20 [1] : vector<128x128xf32> to vector<128xf32>
    %31 = vector.shape_cast %30 : vector<128xf32> to vector<128x1xf32>
    %32 = tpu.reciprocal %31 {approx = true} : vector<128x1xf32> -> vector<128x1xf32>
    %33 = vector.broadcast %32 : vector<128x1xf32> to vector<128x128xf32>
    %34 = arith.mulf %29, %33 : vector<128x128xf32>
    %35 = arith.truncf %34 : vector<128x128xf32> to vector<128x128xbf16>
    %cst_21 = arith.constant dense<0.000000e+00> : vector<128x32xf32>
    %36 = tpu.matmul %35, %13, %cst_21 {dimension_numbers = #tpu.dot_dimension_numbers<[1], [0], [0], [1], [0, 0, 1, 1], [], []>} : vector<128x128xbf16>, vector<128x32xbf16>, vector<128x32xf32> -> vector<128x32xf32>
    %cst_22 = arith.constant 0.000000e+00 : f32
    %37 = vector.broadcast %cst_22 : f32 to vector<128x32xf32>
    %38 = arith.cmpf ogt, %36, %37 : vector<128x32xf32>
    %cst_23 = arith.constant 0.000000e+00 : f32
    %39 = vector.broadcast %cst_23 : f32 to vector<128x32xf32>
    %40 = arith.minimumf %36, %39 : vector<128x32xf32>
    %41 = math.exp %40 : vector<128x32xf32>
    %cst_24 = arith.constant 1.000000e+00 : f32
    %42 = vector.broadcast %cst_24 : f32 to vector<128x32xf32>
    %43 = arith.subf %41, %42 : vector<128x32xf32>
    %44 = arith.select %38, %36, %43 : vector<128x32xi1>, vector<128x32xf32>
    %45 = arith.truncf %44 : vector<128x32xf32> to vector<128x32xbf16>
    %c0_25 = arith.constant 0 : index
    %c0_26 = arith.constant 0 : index
    %46 = vector.load %arg8[%c0_25, %c0_26] : memref<32x32xbf16, #tpu.memory_space<vmem>>, vector<32x32xbf16>
    %cst_27 = arith.constant dense<0.000000e+00> : vector<128x32xf32>
    %47 = tpu.matmul %45, %46, %cst_27 {dimension_numbers = #tpu.dot_dimension_numbers<[1], [0], [0], [1], [0, 0, 1, 1], [], []>} : vector<128x32xbf16>, vector<32x32xbf16>, vector<128x32xf32> -> vector<128x32xf32>
    %c0_28 = arith.constant 0 : index
    %c0_29 = arith.constant 0 : index
    %48 = vector.load %arg9[%c0_28, %c0_29] : memref<1x32xf32, #tpu.memory_space<vmem>>, vector<1x32xf32>
    %49 = vector.broadcast %48 : vector<1x32xf32> to vector<128x32xf32>
    %50 = arith.addf %47, %49 : vector<128x32xf32>
    %cst_30 = arith.constant 0.000000e+00 : f32
    %51 = vector.broadcast %cst_30 : f32 to vector<128x32xf32>
    %52 = arith.maximumf %50, %51 : vector<128x32xf32>
    %53 = arith.truncf %52 : vector<128x32xf32> to vector<128x32xbf16>
    %c0_31 = arith.constant 0 : index
    %c0_32 = arith.constant 0 : index
    %54 = vector.load %arg10[%c0_31, %c0_32] : memref<32x4xbf16, #tpu.memory_space<vmem>>, vector<32x4xbf16>
    %cst_33 = arith.constant dense<0.000000e+00> : vector<128x4xf32>
    %55 = tpu.matmul %53, %54, %cst_33 {dimension_numbers = #tpu.dot_dimension_numbers<[1], [0], [0], [1], [0, 0, 1, 1], [], []>} : vector<128x32xbf16>, vector<32x4xbf16>, vector<128x4xf32> -> vector<128x4xf32>
    %c0_34 = arith.constant 0 : index
    %c0_35 = arith.constant 0 : index
    %56 = vector.load %arg11[%c0_34, %c0_35] : memref<1x4xf32, #tpu.memory_space<vmem>>, vector<1x4xf32>
    %57 = vector.broadcast %56 : vector<1x4xf32> to vector<128x4xf32>
    %58 = arith.addf %55, %57 : vector<128x4xf32>
    %cst_36 = arith.constant dense<0xFF800000> : vector<128xf32>
    %59 = vector.multi_reduction <maximumf>, %58, %cst_36 [1] : vector<128x4xf32> to vector<128xf32>
    %60 = vector.shape_cast %59 : vector<128xf32> to vector<128x1xf32>
    %61 = vector.broadcast %60 : vector<128x1xf32> to vector<128x4xf32>
    %62 = arith.subf %58, %61 : vector<128x4xf32>
    %63 = math.exp %62 : vector<128x4xf32>
    %cst_37 = arith.constant dense<0.000000e+00> : vector<128xf32>
    %64 = vector.multi_reduction <add>, %63, %cst_37 [1] : vector<128x4xf32> to vector<128xf32>
    %65 = vector.shape_cast %64 : vector<128xf32> to vector<128x1xf32>
    %66 = tpu.reciprocal %65 : vector<128x1xf32> -> vector<128x1xf32>
    %67 = vector.broadcast %66 : vector<128x1xf32> to vector<128x4xf32>
    %68 = arith.mulf %63, %67 : vector<128x4xf32>
    %c0_38 = arith.constant 0 : index
    %c0_39 = arith.constant 0 : index
    %c0_40 = arith.constant 0 : index
    %69 = vector.load %arg12[%c0_38, %c0_39, %c0_40] : memref<1x128x4xf32, #tpu.memory_space<vmem>>, vector<1x128x4xf32>
    %70 = vector.shape_cast %69 : vector<1x128x4xf32> to vector<128x4xf32>
    %71 = vector.shape_cast %68 : vector<128x4xf32> to vector<1x128x4xf32>
    tpu.vector_store %arg12[%c0_38, %c0_39, %c0_40], %71 {strides = array<i32>} : memref<1x128x4xf32, #tpu.memory_space<vmem>>, vector<1x128x4xf32>,
    return
  }
  func.func @transform_0(%arg0: i32) -> (i32, i32, i32) {
    %c0_i32 = arith.constant 0 : i32
    %c0_i32_0 = arith.constant 0 : i32
    %c0_i32_1 = arith.constant 0 : i32
    return %arg0, %c0_i32, %c0_i32_0 : i32, i32, i32
  }
  func.func @transform_1(%arg0: i32) -> (i32, i32) {
    %c0_i32 = arith.constant 0 : i32
    %c0_i32_0 = arith.constant 0 : i32
    %c0_i32_1 = arith.constant 0 : i32
    return %c0_i32, %c0_i32_0 : i32, i32
  }
  func.func @transform_2(%arg0: i32) -> (i32, i32) {
    %c0_i32 = arith.constant 0 : i32
    %c0_i32_0 = arith.constant 0 : i32
    %c0_i32_1 = arith.constant 0 : i32
    return %c0_i32, %c0_i32_0 : i32, i32
  }
  func.func @transform_3(%arg0: i32) -> (i32, i32) {
    %c0_i32 = arith.constant 0 : i32
    %c0_i32_0 = arith.constant 0 : i32
    %c0_i32_1 = arith.constant 0 : i32
    return %c0_i32, %c0_i32_0 : i32, i32
  }
  func.func @transform_4(%arg0: i32) -> (i32, i32) {
    %c0_i32 = arith.constant 0 : i32
    %c0_i32_0 = arith.constant 0 : i32
    %c0_i32_1 = arith.constant 0 : i32
    return %c0_i32, %c0_i32_0 : i32, i32
  }
  func.func @transform_5(%arg0: i32) -> (i32, i32) {
    %c0_i32 = arith.constant 0 : i32
    %c0_i32_0 = arith.constant 0 : i32
    %c0_i32_1 = arith.constant 0 : i32
    return %c0_i32, %c0_i32_0 : i32, i32
  }
  func.func @transform_6(%arg0: i32) -> (i32, i32) {
    %c0_i32 = arith.constant 0 : i32
    %c0_i32_0 = arith.constant 0 : i32
    %c0_i32_1 = arith.constant 0 : i32
    return %c0_i32, %c0_i32_0 : i32, i32
  }
  func.func @transform_7(%arg0: i32) -> (i32, i32) {
    %c0_i32 = arith.constant 0 : i32
    %c0_i32_0 = arith.constant 0 : i32
    %c0_i32_1 = arith.constant 0 : i32
    return %c0_i32, %c0_i32_0 : i32, i32
  }
  func.func @transform_8(%arg0: i32) -> (i32, i32) {
    %c0_i32 = arith.constant 0 : i32
    %c0_i32_0 = arith.constant 0 : i32
    %c0_i32_1 = arith.constant 0 : i32
    return %c0_i32, %c0_i32_0 : i32, i32
  }
  func.func @transform_9(%arg0: i32) -> (i32, i32) {
    %c0_i32 = arith.constant 0 : i32
    %c0_i32_0 = arith.constant 0 : i32
    %c0_i32_1 = arith.constant 0 : i32
    return %c0_i32, %c0_i32_0 : i32, i32
  }
  func.func @transform_10(%arg0: i32) -> (i32, i32) {
    %c0_i32 = arith.constant 0 : i32
    %c0_i32_0 = arith.constant 0 : i32
    %c0_i32_1 = arith.constant 0 : i32
    return %c0_i32, %c0_i32_0 : i32, i32
  }
  func.func @transform_11(%arg0: i32) -> (i32, i32, i32) {
    %c0_i32 = arith.constant 0 : i32
    %c0_i32_0 = arith.constant 0 : i32
    %c0_i32_1 = arith.constant 0 : i32
    return %arg0, %c0_i32, %c0_i32_0 : i32, i32, i32
  }
}

</mosaic_0001>

<bundles_post_ra>
// kernel: graph_attention_forward.1
= control target key start
LH: loop header
LB: loop body
LE: loop exit
PB: predicated region body
PF: predicated region fallthrough
CT: control target
= control target key end

     0   :  { %s2582_s17 = smov 0   ;;  %s3154_s0 = inlined_call_operand.vmem [shape: bf16[8,128,4], index: 0, kind: input, shape index: {}]   ;;  %s3155_s1 = inlined_call_operand.vmem [shape: f32[128,128], index: 1, kind: input, shape index: {}]   ;;  %s3156_s2 = inlined_call_operand.vmem [shape: bf16[4,32], index: 2, kind: input, shape index: {}]   ;;  %s3157_s3 = inlined_call_operand.vmem [shape: f32[1,32], index: 3, kind: input, shape index: {}]   ;;  %s3158_s4 = inlined_call_operand.vmem [shape: bf16[32,32], index: 4, kind: input, shape index: {}]   ;;  %s3159_s5 = inlined_call_operand.vmem [shape: bf16[32,1], index: 5, kind: input, shape index: {}]   ;;  %s3160_s6 = inlined_call_operand.vmem [shape: bf16[1,32], index: 6, kind: input, shape index: {}]   ;;  %s3161_s7 = inlined_call_operand.vmem [shape: bf16[32,32], index: 7, kind: input, shape index: {}]   ;;  %s3162_s8 = inlined_call_operand.vmem [shape: f32[1,32], index: 8, kind: input, shape index: {}]   ;;  %s3163_s9 = inlined_call_operand.vmem [shape: bf16[32,4], index: 9, kind: input, shape index: {}]   ;;  %s3164_s10 = inlined_call_operand.vmem [shape: f32[1,4], index: 10, kind: input, shape index: {}]   ;;  %s3165_s11 = inlined_call_operand.vmem [shape: f32[8,128,4], index: 11, kind: output, shape index: {}]  }
   0x1 LB: > { %s2005_s18 = sadd.s32 4294967295, %s2517_s17   ;;  %p2009_p0 = scmp.ge.s32.totalorder %s2517_s17, 1  ;;  %s2517_s17 = sphi %s2582_s17, %s21_s17  }
   0x2   : > { %p337_p1 = scmp.lt.s32.totalorder %s2517_s17, 9 }
   0x4   : > { %p338_p2 = pnand %p2009_p0, %p337_p1 }
   0x5   : > { %p377_p3 = scmp.lt.s32.totalorder (!%p338_p2), %s2005_s18, 7 }
   0x6   : > { %341 = sbr.rel (%p338_p2) target bundleno = 2043 (0x7fb), region = 64 }
   0xb   : > { %v420_v0 = vld [vmem:[%s3156_s2] sm:$0x3]  ;;  %vm493_vm0 = vcmask 1041408   ;;  %s3167_s18 = smov (!%p377_p3, %s2005_s18), 7  ;;  %vm468_vm1 = vcmask 31744   ;;  %v2343_v10 = vld [vmem:[%s3158_s4 + $0x8] sm:$0xff]  }
   0xc   : > { %2320 = vmatprep.subr.msk.bf16.mxu0 %vm493_vm0, %v420_v0  ;;  %v495_v1 = vsel %vm493_vm0, %v420_v0, 0  ;;  %2321 = vmatprep.subr.msk.bf16.mxu1 %vm493_vm0, %v420_v0  ;;  %s2092_s21 = sshll.u32 %s3167_s18, 6  ;;  %v2344_v11 = vld [vmem:[%s3158_s4] sm:$0xff]   ;;  %v2345_v12 = vld [vmem:[%s3159_s5 + $0x8] sm:$0xff]   ;;  %vm634_vm2 = vcmask 261120   ;;  %vm2520_vm3 = vmmov 0  }
   0xd   : > { %2169 = vmatpush3.bf16.msra.mxu0 %v495_v1  ;;  %2319 = vmatpush3.bf16.msra.mxu1 %v495_v1  ;;  %s381_s24 = scalar_lea.vmem %s3154_s0, %s2092_s21  ;;  %v2346_v13 = vld [vmem:[%s3159_s5] sm:$0xff]   ;;  %s2093_s30 = sshll.u32 %s3167_s18, 7 }
   0xe   : > { %v2335_v2 = vld [vmem:[%s381_s24] sm:$0xff]   ;;  %v2336_v3 = vld [vmem:[%s381_s24 + $0x8] sm:$0xff]   ;;  %v2337_v4 = vld [vmem:[%s381_s24 + $0x10] sm:$0xff]   ;;  %2186 = vmatprep.subr.bf16.mxu1 %v2343_v10  ;;  %2206 = vmatprep.subr.bf16.mxu0 %v2345_v12  ;;  %s3101_s14 = scalar_lea.vmem %s3165_s11, %s2093_s30 }
   0xf   : > { %2170 = vmatprep.mubr.msk.bf16.mxu0 %vm468_vm1, %v2335_v2  ;;  %v2338_v5 = vld [vmem:[%s381_s24 + $0x18] sm:$0xff]   ;;  %v2339_v6 = vld [vmem:[%s381_s24 + $0x20] sm:$0xff]   ;;  %v2341_v7 = vld [vmem:[%s381_s24 + $0x30] sm:$0xff]  }
  0x10   : > { %2171 = vmatmul.mubr.msk.bf16.vlgmr.msra.gmra.mxu0 %vm468_vm1, %v2336_v3  ;;  %v2342_v8 = vld [vmem:[%s381_s24 + $0x38] sm:$0xff]   ;;  %2182 = vmatprep.mubr.msk.bf16.mxu1 %vm468_vm1, %v2341_v7  ;;  %v2340_v9 = vld [vmem:[%s381_s24 + $0x28] sm:$0xff]   ;;  %v2014_v16 = vld [vmem:[%s3157_s3] ss:$0 sm:$0xff]  ;;  %v2519_v7 = vmov 0.0  }
  0x11   : > { %2174 = vmatprep.mubr.msk.bf16.mxu0 %vm468_vm1, %v2337_v4  ;;  %2183 = vmatmul.mubr.msk.bf16.vlgmr.msra.gmra.mxu1 %vm468_vm1, %v2342_v8  ;;  %v2521_v8 = vmov 0  }
  0x12   : > { %2187 = vmatpush3.bf16.msra.mxu1 %v2343_v10  ;;  %2207 = vmatpush3.bf16.msra.mxu0 %v2345_v12 }
  0x13   : > { %2188 = vmatprep.subr.bf16.mxu1 %v2344_v11  ;;  %2208 = vmatprep.subr.bf16.mxu0 %v2346_v13 }
  0x14   : > { %2333 = vset.pattern.permute.xlu1 %v2521_v8  ;;  %2334 = vset.pattern.permute.xlu0 %v2521_v8 }
  0x16   : > { %2189 = vmatpush3.bf16.msra.mxu1 %v2344_v11  ;;  %2209 = vmatpush3.bf16.msra.mxu0 %v2346_v13 }
  0x17   : > { %2226 = vmatprep.subr.bf16.mxu1 %v2519_v7 }
  0x18   : > { %2175 = vmatmul.mubr.msk.bf16.gmra.mxu0 %vm468_vm1, %v2338_v5 }
  0x19   : > { %2178 = vmatprep.mubr.msk.bf16.mxu0 %vm468_vm1, %v2339_v6 }
  0x20   : > { %2179 = vmatmul.mubr.msk.bf16.gmra.mxu0 %vm468_vm1, %v2340_v9 }
  0xd0   : > { %v2172_v14 = vpop.f32.mrf.mxu0 }
  0xd1   : > { %v540_v20 = vadd.f32 %v2172_v14, %v2014_v16  ;;  %v2184_v22 = vpop.f32.mrf.mxu1 }
  0xd2   : > { %v531_v15 = vpop.f32.mrf.mxu0  ;;  %v588_v1 = vadd.f32 %v2184_v22, %v2014_v16 }
  0xd3   : > { %v532_v18 = vadd.f32 %v2014_v16, %v531_v15  ;;  %v579_v26 = vpop.f32.mrf.mxu1  ;;  %v596_v29 = vmax.f32 %v540_v20, 0.0 }
  0xd4   : > { %v2173_v17 = vpop.f32.mrf.mxu0  ;;  %v580_v48 = vadd.f32 %v2014_v16, %v579_v26  ;;  %v608_v4 = vmax.f32 %v588_v1, 0.0 }
  0xd5   : > { %v543_v19 = vadd.f32 %v2173_v17, %v2014_v16  ;;  %v594_v27 = vmax.f32 %v532_v18, 0.0  ;;  %v2185_v34 = vpop.f32.mrf.mxu1 }
  0xd6   : > { %v534_v21 = vpop.f32.mrf.mxu0  ;;  %v606_v56 = vmax.f32 %v580_v48, 0.0  ;;  %v591_v3 = vadd.f32 %v2185_v34, %v2014_v16 }
  0xd7   : > { %v535_v23 = vadd.f32 %v2014_v16, %v534_v21  ;;  %v597_v24 = vmax.f32 %v543_v19, 0.0  ;;  %v582_v42 = vpop.f32.mrf.mxu1 }
  0xd8   : > { %v2176_v25 = vpop.f32.mrf.mxu0  ;;  %v583_v49 = vadd.f32 %v2014_v16, %v582_v42  ;;  %v609_v5 = vmax.f32 %v591_v3, 0.0 }
  0xd9   : > { %v595_v28 = vmax.f32 %v535_v23, 0.0  ;;  %v611_v32 = vpack.c.bf16 %v597_v24, %v596_v29  ;;  %v556_v37 = vadd.f32 %v2176_v25, %v2014_v16 }
  0xda   : > { %v547_v30 = vpop.f32.mrf.mxu0  ;;  %v607_v58 = vmax.f32 %v583_v49, 0.0  ;;  %v617_v6 = vpack.c.bf16 %v609_v5, %v608_v4 }
  0xdb   : > { %v610_v31 = vpack.c.bf16 %v595_v28, %v594_v27  ;;  %v548_v35 = vadd.f32 %v2014_v16, %v547_v30  ;;  %v600_v45 = vmax.f32 %v556_v37, 0.0 }
  0xdc   : > { %v2177_v33 = vpop.f32.mrf.mxu0  ;;  %v616_v0 = vpack.c.bf16 %v607_v58, %v606_v56 }
  0xdd   : > { %v559_v36 = vadd.f32 %v2177_v33, %v2014_v16  ;;  %2190 = vmatprep.mubr.msk.bf16.mxu1 %vm634_vm2, %v610_v31  ;;  %v598_v43 = vmax.f32 %v548_v35, 0.0 }
  0xde   : > { %v550_v38 = vpop.f32.mrf.mxu0  ;;  %2191 = vmatmul.mubr.msk.bf16.vlgmr.msra.gmra.mxu1 %vm634_vm2, %v611_v32 }
  0xdf   : > { %v551_v39 = vadd.f32 %v2014_v16, %v550_v38  ;;  %v601_v40 = vmax.f32 %v559_v36, 0.0 }
  0xe0   : > { %v2180_v41 = vpop.f32.mrf.mxu0 }
  0xe1   : > { %v599_v44 = vmax.f32 %v551_v39, 0.0  ;;  %v613_v50 = vpack.c.bf16 %v601_v40, %v600_v45  ;;  %v572_v54 = vadd.f32 %v2180_v41, %v2014_v16  ;;  %v901_v41 = vld [vmem:[%s3160_s6] sm:$0x1] }
  0xe2   : > { %v563_v46 = vpop.f32.mrf.mxu0 }
  0xe3   : > { %v612_v47 = vpack.c.bf16 %v599_v44, %v598_v43  ;;  %v564_v52 = vadd.f32 %v2014_v16, %v563_v46  ;;  %v604_v62 = vmax.f32 %v572_v54, 0.0 }
  0xe4   : > { %v2181_v51 = vpop.f32.mrf.mxu0 }
  0xe5   : > { %v575_v53 = vadd.f32 %v2181_v51, %v2014_v16  ;;  %2194 = vmatprep.mubr.msk.bf16.mxu1 %vm634_vm2, %v612_v47  ;;  %v602_v60 = vmax.f32 %v564_v52, 0.0 }
  0xe6   : > { %v566_v55 = vpop.f32.mrf.mxu0  ;;  %2195 = vmatmul.mubr.msk.bf16.gmra.mxu1 %vm634_vm2, %v613_v50 }
  0xe7   : > { %v567_v57 = vadd.f32 %v2014_v16, %v566_v55  ;;  %v605_v59 = vmax.f32 %v575_v53, 0.0 }
  0xe9   : > { %v603_v61 = vmax.f32 %v567_v57, 0.0  ;;  %v615_v2 = vpack.c.bf16 %v605_v59, %v604_v62  ;;  %v1025_v62 = vlaneseq }
  0xeb   : > { %v614_v63 = vpack.c.bf16 %v603_v61, %v602_v60 }
  0xed   : > { %2198 = vmatprep.mubr.msk.bf16.mxu1 %vm634_vm2, %v614_v63  ;;  %v1026_v63 = vshrl.u32 %v1025_v62, 7  ;;  %v413_v62 = vld [vmem:[%s3155_s1 + $0x48] sm:$0xff] }
  0xee   : > { %2199 = vmatmul.mubr.msk.bf16.gmra.mxu1 %vm634_vm2, %v615_v2 }
  0xef   : > { %2202 = vmatprep.mubr.msk.bf16.mxu1 %vm634_vm2, %v616_v0  ;;  %v1027_v0 = vsub.s32 0, %v1026_v63 }
  0xf6   : > { %2203 = vmatmul.mubr.msk.bf16.gmra.mxu1 %vm634_vm2, %v617_v6 }
  0xf7   : > { %2242 = vmatprep.mubr.msk.bf16.mxu1 %vm2520_vm3, %v2519_v7 }
 0x19e   : > { %v2192_v9 = vpop.f32.mrf.mxu1 }
 0x1a0   : > { %v693_v10 = vpop.f32.mrf.mxu1 }
 0x1a2   : > { %v2193_v11 = vpop.f32.mrf.mxu1 }
 0x1a3   : > { %v757_v14 = vpack.c.bf16 %v2193_v11, %v2192_v9  ;;  %v404_v11 = vld [vmem:[%s3155_s1] sm:$0xff] }
 0x1a4   : > { %v696_v12 = vpop.f32.mrf.mxu1 }
 0x1a5   : > { %v2632_v13 = vpack.c.bf16 %v696_v12, %v693_v10  ;;  %v784_v39 = vsel %vm634_vm2, %v757_v14, 0 }
 0x1a6   : > { %v2196_v15 = vpop.f32.mrf.mxu1 }
 0x1a7   : > { %2210 = vmatprep.mubr.msk.bf16.mxu0 %vm634_vm2, %v2632_v13  ;;  %v781_v40 = vsel %vm634_vm2, %v2632_v13, 0 }
 0x1a8   : > { %v709_v16 = vpop.f32.mrf.mxu1  ;;  %2211 = vmatmul.mubr.msk.bf16.vlgmr.msra.gmra.mxu0 %vm634_vm2, %v757_v14 }
 0x1aa   : > { %v2197_v17 = vpop.f32.mrf.mxu1 }
 0x1ab   : > { %v759_v20 = vpack.c.bf16 %v2197_v17, %v2196_v15 }
 0x1ac   : > { %v712_v18 = vpop.f32.mrf.mxu1 }
 0x1ad   : > { %v758_v19 = vpack.c.bf16 %v712_v18, %v709_v16  ;;  %v790_v37 = vsel %vm634_vm2, %v759_v20, 0 }
 0x1ae   : > { %v2200_v21 = vpop.f32.mrf.mxu1 }
 0x1af   : > { %2214 = vmatprep.mubr.msk.bf16.mxu0 %vm634_vm2, %v758_v19  ;;  %v787_v38 = vsel %vm634_vm2, %v758_v19, 0 }
 0x1b0   : > { %v725_v22 = vpop.f32.mrf.mxu1  ;;  %2215 = vmatmul.mubr.msk.bf16.gmra.mxu0 %vm634_vm2, %v759_v20 }
 0x1b2   : > { %v2201_v23 = vpop.f32.mrf.mxu1 }
 0x1b3   : > { %v761_v26 = vpack.c.bf16 %v2201_v23, %v2200_v21 }
 0x1b4   : > { %v728_v24 = vpop.f32.mrf.mxu1 }
 0x1b5   : > { %v760_v25 = vpack.c.bf16 %v728_v24, %v725_v22  ;;  %v796_v35 = vsel %vm634_vm2, %v761_v26, 0 }
 0x1b6   : > { %v2204_v27 = vpop.f32.mrf.mxu1 }
 0x1b7   : > { %2218 = vmatprep.mubr.msk.bf16.mxu0 %vm634_vm2, %v760_v25  ;;  %v793_v36 = vsel %vm634_vm2, %v760_v25, 0 }
 0x1b8   : > { %v741_v28 = vpop.f32.mrf.mxu1  ;;  %2219 = vmatmul.mubr.msk.bf16.gmra.mxu0 %vm634_vm2, %v761_v26 }
 0x1ba   : > { %v2205_v29 = vpop.f32.mrf.mxu1 }
 0x1bb   : > { %v763_v30 = vpack.c.bf16 %v2205_v29, %v2204_v27 }
 0x1bc   : > { %v744_v31 = vpop.f32.mrf.mxu1 }
 0x1bd   : > { %v762_v32 = vpack.c.bf16 %v744_v31, %v741_v28  ;;  %2246 = vmatprep.subr.bf16.mxu0 %v763_v30  ;;  %v802_v33 = vsel %vm634_vm2, %v763_v30, 0  ;;  %v407_v28 = vld [vmem:[%s3155_s1 + $0x18] sm:$0xff] }
 0x1be   : > { %2227 = vmatpush3.bf16.xpose.msra.mxu1 %v802_v33  ;;  %2247 = vmatpush3.bf16.msra.mxu0 %v763_v30 }
 0x1bf   : > { %2222 = vmatprep.mubr.msk.bf16.mxu0 %vm634_vm2, %v762_v32  ;;  %2248 = vmatprep.subr.bf16.mxu0 %v762_v32  ;;  %v799_v34 = vsel %vm634_vm2, %v762_v32, 0 }
 0x1c0   : > { %2223 = vmatmul.mubr.msk.bf16.gmra.mxu0 %vm634_vm2, %v763_v30  ;;  %2228 = vmatprep.subr.bf16.mxu1 %v2519_v7 }
 0x1c2   : > { %2249 = vmatpush3.bf16.msra.mxu0 %v762_v32 }
 0x1c3   : > { %2250 = vmatprep.subr.bf16.mxu0 %v761_v26 }
 0x1c6   : > { %2229 = vmatpush3.bf16.xpose.msra.mxu1 %v799_v34  ;;  %2251 = vmatpush3.bf16.msra.mxu0 %v761_v26 }
 0x1c7   : > { %2252 = vmatprep.subr.bf16.mxu0 %v760_v25  ;;  %2230 = vmatprep.subr.bf16.mxu1 %v2519_v7 }
 0x1ca   : > { %2253 = vmatpush3.bf16.msra.mxu0 %v760_v25 }
 0x1cb   : > { %2254 = vmatprep.subr.bf16.mxu0 %v759_v20 }
 0x1ce   : > { %2231 = vmatpush3.bf16.xpose.msra.mxu1 %v796_v35  ;;  %2255 = vmatpush3.bf16.msra.mxu0 %v759_v20  ;;  %v406_v20 = vld [vmem:[%s3155_s1 + $0x10] sm:$0xff] }
 0x1cf   : > { %2256 = vmatprep.subr.bf16.mxu0 %v758_v19  ;;  %2232 = vmatprep.subr.bf16.mxu1 %v2519_v7 }
 0x1d2   : > { %2257 = vmatpush3.bf16.msra.mxu0 %v758_v19  ;;  %v405_v19 = vld [vmem:[%s3155_s1 + $0x8] sm:$0xff] }
 0x1d3   : > { %2258 = vmatprep.subr.bf16.mxu0 %v757_v14 }
 0x1d6   : > { %2233 = vmatpush3.bf16.xpose.msra.mxu1 %v793_v36  ;;  %2259 = vmatpush3.bf16.msra.mxu0 %v757_v14 }
 0x1d7   : > { %2260 = vmatprep.subr.bf16.mxu0 %v2632_v13  ;;  %2234 = vmatprep.subr.bf16.mxu1 %v2519_v7 }
 0x1da   : > { %2261 = vmatpush3.bf16.msra.mxu0 %v2632_v13 }
 0x1de   : > { %2235 = vmatpush3.bf16.xpose.msra.mxu1 %v790_v37  ;;  %v408_v37 = vld [vmem:[%s3155_s1 + $0x20] sm:$0xff] }
 0x1df   : > { %2236 = vmatprep.subr.bf16.mxu1 %v2519_v7 }
 0x1e6   : > { %2237 = vmatpush3.bf16.xpose.msra.mxu1 %v787_v38  ;;  %v409_v38 = vld [vmem:[%s3155_s1 + $0x28] sm:$0xff] }
 0x1e7   : > { %2238 = vmatprep.subr.bf16.mxu1 %v2519_v7 }
 0x1ee   : > { %2239 = vmatpush3.bf16.xpose.msra.mxu1 %v784_v39 }
 0x1ef   : > { %2240 = vmatprep.subr.bf16.mxu1 %v2519_v7 }
 0x1f6   : > { %2241 = vmatpush3.bf16.xpose.msra.mxu1 %v781_v40 }
 0x1fd   : > { %2243 = vmatmul.mubr.msk.bf16.vlgmr.msra.gmra.mxu1 %vm634_vm2, %v901_v41 }
 0x268   : > { %v2212_v42 = vpop.f32.mrf.mxu0 }
 0x269   : > { %957 = vperm.xlu1 %2333, %v2212_v42  }
 0x26a   : > { %v838_v43 = vpop.f32.mrf.mxu0 }
 0x26b   : > { %947 = vperm.xlu0 %2334, %v838_v43  }
 0x26c   : > { %v2213_v44 = vpop.f32.mrf.mxu0 }
 0x26d   : > { %962 = vperm.xlu1 %2333, %v2213_v44  }
 0x26e   : > { %v841_v45 = vpop.f32.mrf.mxu0 }
 0x26f   : > { %952 = vperm.xlu0 %2334, %v841_v45  }
 0x270   : > { %v2216_v46 = vpop.f32.mrf.mxu0 }
 0x272   : > { %v854_v47 = vpop.f32.mrf.mxu0 }
 0x273   : > { %977 = vperm.xlu0 %2334, %v2216_v46  }
 0x274   : > { %v2217_v48 = vpop.f32.mrf.mxu0 }
 0x276   : > { %v857_v49 = vpop.f32.mrf.mxu0 }
 0x277   : > { %967 = vperm.xlu0 %2334, %v854_v47   ;;  %972 = vperm.xlu1 %2333, %v857_v49   ;;  %v410_v49 = vld [vmem:[%s3155_s1 + $0x30] sm:$0xff] }
 0x278   : > { %v2220_v50 = vpop.f32.mrf.mxu0 }
 0x27a   : > { %v870_v51 = vpop.f32.mrf.mxu0 }
 0x27b   : > { %982 = vperm.xlu1 %2333, %v2217_v48   ;;  %997 = vperm.xlu0 %2334, %v2220_v50   ;;  %v411_v50 = vld [vmem:[%s3155_s1 + $0x38] sm:$0xff] }
 0x27c   : > { %v2221_v52 = vpop.f32.mrf.mxu0 }
 0x27e   : > { %v873_v53 = vpop.f32.mrf.mxu0 }
 0x27f   : > { %987 = vperm.xlu0 %2334, %v870_v51   ;;  %992 = vperm.xlu1 %2333, %v873_v53  }
 0x280   : > { %v2224_v54 = vpop.f32.mrf.mxu0 }
 0x282   : > { %v886_v55 = vpop.f32.mrf.mxu0 }
 0x283   : > { %1002 = vperm.xlu1 %2333, %v2221_v52   ;;  %1017 = vperm.xlu0 %2334, %v2224_v54  }
 0x284   : > { %v2225_v56 = vpop.f32.mrf.mxu0 }
 0x286   : > { %v889_v57 = vpop.f32.mrf.mxu0 }
 0x287   : > { %1007 = vperm.xlu0 %2334, %v886_v55   ;;  %1012 = vperm.xlu1 %2333, %v889_v57  }
 0x28b   : > { %1022 = vperm.xlu1 %2333, %v2225_v56  }
 0x2bd   : > { %v939_v58 = vpop.f32.mrf.mxu1 }
 0x2be   : > { %v2665_v1 = vrot.slane %v939_v58, %v1027_v0 }
 0x2bf   : > { %v2244_v59 = vpop.f32.mrf.mxu1 }
 0x2c1   : > { %v942_v60 = vpop.f32.mrf.mxu1 }
 0x2c3   : > { %v2245_v61 = vpop.f32.mrf.mxu1 }
 0x2c4   : > { %v412_v61 = vld [vmem:[%s3155_s1 + $0x40] sm:$0xff] }
 0x2e4   : > { %v958_v2 = vpop.permute.xlu1 %957 }
 0x2e5   : > { %v1031_v3 = vadd.f32 %v2665_v1, %v958_v2 }
 0x2e6   : > { %v948_v4 = vpop.permute.xlu0 %947 }
 0x2e7   : > { %v1029_v5 = vadd.f32 %v2665_v1, %v948_v4  ;;  %v1047_v7 = vmul.f32 0.2, %v1031_v3 }
 0x2e8   : > { %v963_v6 = vpop.permute.xlu1 %962 }
 0x2e9   : > { %v1045_v8 = vmul.f32 0.2, %v1029_v5  ;;  %v1032_v9 = vadd.f32 %v2665_v1, %v963_v6  ;;  %v1063_v14 = vmax.f32 %v1031_v3, %v1047_v7 }
 0x2ea   : > { %v953_v10 = vpop.permute.xlu0 %952 }
 0x2eb   : > { %v1061_v12 = vmax.f32 %v1029_v5, %v1045_v8  ;;  %v1030_v13 = vadd.f32 %v2665_v1, %v953_v10  ;;  %v1048_v15 = vmul.f32 0.2, %v1032_v9  ;;  %v2686_v25 = vadd.f32 %v1063_v14, %v406_v20  ;;  %v414_v8 = vld [vmem:[%s3155_s1 + $0x50] sm:$0xff] }
 0x2ed   : > { %v1046_v16 = vmul.f32 0.2, %v1030_v13  ;;  %v2674_v17 = vadd.f32 %v1061_v12, %v404_v11  ;;  %v1064_v22 = vmax.f32 %v1032_v9, %v1048_v15  ;;  %v415_v11 = vld [vmem:[%s3155_s1 + $0x58] sm:$0xff] }
 0x2ee   : > { %v978_v18 = vpop.permute.xlu0 %977 }
 0x2ef   : > { %v1062_v21 = vmax.f32 %v1030_v13, %v1046_v16  ;;  %1093 = vmax.xlane.f32.xlu0 %v2674_v17  ;;  %v1035_v23 = vadd.f32 %v2665_v1, %v978_v18  ;;  %v2695_v34 = vadd.f32 %v1064_v22, %v407_v28  ;;  %v416_v22 = vld [vmem:[%s3155_s1 + $0x60] sm:$0xff] }
 0x2f1   : > { %v2684_v24 = vadd.f32 %v1062_v21, %v405_v19  ;;  %v1051_v31 = vmul.f32 0.2, %v1035_v23 }
 0x2f2   : > { %v968_v26 = vpop.permute.xlu0 %967  ;;  %v973_v27 = vpop.permute.xlu1 %972 }
 0x2f3   : > { %v1033_v29 = vadd.f32 %v2665_v1, %v968_v26  ;;  %v1034_v30 = vadd.f32 %v2665_v1, %v973_v27  ;;  %1095 = vmax.xlane.f32.xlu1 %v2684_v24  ;;  %1097 = vmax.xlane.f32.xlu0 %v2686_v25  ;;  %v1067_v43 = vmax.f32 %v1035_v23, %v1051_v31  ;;  %v417_v23 = vld [vmem:[%s3155_s1 + $0x68] sm:$0xff] }
 0x2f5   : > { %v1049_v32 = vmul.f32 0.2, %v1033_v29  ;;  %v1050_v33 = vmul.f32 0.2, %v1034_v30  ;;  %v2720_v57 = vadd.f32 %v1067_v43, %v410_v49 }
 0x2f6   : > { %v983_v35 = vpop.permute.xlu1 %982  ;;  %v998_v36 = vpop.permute.xlu0 %997 }
 0x2f7   : > { %v1065_v39 = vmax.f32 %v1033_v29, %v1049_v32  ;;  %v1066_v40 = vmax.f32 %v1034_v30, %v1050_v33  ;;  %v1036_v41 = vadd.f32 %v2665_v1, %v983_v35  ;;  %1099 = vmax.xlane.f32.xlu0 %v2695_v34  ;;  %v1039_v42 = vadd.f32 %v2665_v1, %v998_v36  ;;  %v418_v33 = vld [vmem:[%s3155_s1 + $0x70] sm:$0xff]  ;;  %v419_v35 = vld [vmem:[%s3155_s1 + $0x78] sm:$0xff] }
 0x2f9   : > { %v1052_v44 = vmul.f32 0.2, %v1036_v41  ;;  %v2706_v45 = vadd.f32 %v1065_v39, %v408_v37  ;;  %v2708_v46 = vadd.f32 %v1066_v40, %v409_v38  ;;  %v1055_v54 = vmul.f32 0.2, %v1039_v42 }
 0x2fa   : > { %v988_v47 = vpop.permute.xlu0 %987  ;;  %v993_v48 = vpop.permute.xlu1 %992 }
 0x2fb   : > { %v1068_v51 = vmax.f32 %v1036_v41, %v1052_v44  ;;  %v1037_v52 = vadd.f32 %v2665_v1, %v988_v47  ;;  %v1038_v53 = vadd.f32 %v2665_v1, %v993_v48  ;;  %1101 = vmax.xlane.f32.xlu1 %v2706_v45  ;;  %1103 = vmax.xlane.f32.xlu0 %v2708_v46 }
 0x2fc   : > { %v1071_v3 = vmax.f32 %v1039_v42, %v1055_v54 }
 0x2fd   : > { %v1053_v55 = vmul.f32 0.2, %v1037_v52  ;;  %v1054_v56 = vmul.f32 0.2, %v1038_v53  ;;  %v2722_v58 = vadd.f32 %v1068_v51, %v411_v50 }
 0x2fe   : > { %v1003_v59 = vpop.permute.xlu1 %1002  ;;  %v1018_v60 = vpop.permute.xlu0 %1017  ;;  %v2748_v15 = vadd.f32 %v1071_v3, %v414_v8 }
 0x2ff   : > { %v1069_v63 = vmax.f32 %v1037_v52, %v1053_v55  ;;  %v1070_v0 = vmax.f32 %v1038_v53, %v1054_v56  ;;  %v1040_v2 = vadd.f32 %v2665_v1, %v1003_v59  ;;  %1105 = vmax.xlane.f32.xlu1 %v2720_v57  ;;  %1107 = vmax.xlane.f32.xlu0 %v2722_v58 }
 0x300   : > { %v1043_v5 = vadd.f32 %v2665_v1, %v1018_v60 }
 0x301   : > { %v1056_v4 = vmul.f32 0.2, %v1040_v2  ;;  %v2734_v6 = vadd.f32 %v1069_v63, %v412_v61  ;;  %v2736_v7 = vadd.f32 %v1070_v0, %v413_v62 }
 0x302   : > { %v1008_v9 = vpop.permute.xlu0 %1007  ;;  %v1013_v10 = vpop.permute.xlu1 %1012  ;;  %v1059_v16 = vmul.f32 0.2, %v1043_v5 }
 0x303   : > { %v1072_v12 = vmax.f32 %v1040_v2, %v1056_v4  ;;  %v1041_v13 = vadd.f32 %v2665_v1, %v1008_v9  ;;  %v1042_v14 = vadd.f32 %v2665_v1, %v1013_v10  ;;  %1109 = vmax.xlane.f32.xlu1 %v2734_v6  ;;  %1111 = vmax.xlane.f32.xlu0 %v2736_v7 }
 0x304   : > { %v1075_v29 = vmax.f32 %v1043_v5, %v1059_v16 }
 0x305   : > { %v1057_v18 = vmul.f32 0.2, %v1041_v13  ;;  %v1058_v19 = vmul.f32 0.2, %v1042_v14  ;;  %v2750_v20 = vadd.f32 %v1072_v12, %v415_v11 }
 0x306   : > { %v1023_v21 = vpop.permute.xlu1 %1022 }
 0x307   : > { %v1073_v26 = vmax.f32 %v1041_v13, %v1057_v18  ;;  %v1074_v27 = vmax.f32 %v1042_v14, %v1058_v19  ;;  %v1044_v28 = vadd.f32 %v2665_v1, %v1023_v21  ;;  %1113 = vmax.xlane.f32.xlu1 %v2748_v15  ;;  %1115 = vmax.xlane.f32.xlu0 %v2750_v20 }
 0x308   : > { %v2773_v1 = vadd.f32 %v1075_v29, %v418_v33 }
 0x309   : > { %v1060_v30 = vmul.f32 0.2, %v1044_v28  ;;  %v2761_v31 = vadd.f32 %v1073_v26, %v416_v22  ;;  %v2763_v32 = vadd.f32 %v1074_v27, %v417_v23 }
 0x30b   : > { %v1076_v36 = vmax.f32 %v1044_v28, %v1060_v30  ;;  %1117 = vmax.xlane.f32.xlu1 %v2761_v31  ;;  %1119 = vmax.xlane.f32.xlu0 %v2763_v32 }
 0x30d   : > { %v2775_v37 = vadd.f32 %v1076_v36, %v419_v35 }
 0x30f   : > { %1121 = vmax.xlane.f32.xlu1 %v2773_v1  ;;  %1123 = vmax.xlane.f32.xlu0 %v2775_v37 }
 0x378   : > { %v1094_v38 = vpop.xlane.xlu0 %1093 }
 0x379   : > { %v1125_v39 = vsub.f32 %v2674_v17, %v1094_v38 }
 0x37b   : > { %v1141_v40 = vmul.f32 1.442695, %v1125_v39 }
 0x37c   : > { %v1096_v41 = vpop.xlane.xlu1 %1095  ;;  %v1098_v42 = vpop.xlane.xlu0 %1097 }
 0x37d   : > { %2351 = vpow2.f32 %v1141_v40  ;;  %v1126_v43 = vsub.f32 %v2684_v24, %v1096_v41  ;;  %v1127_v44 = vsub.f32 %v2686_v25, %v1098_v42 }
 0x37f   : > { %v1143_v47 = vmul.f32 1.442695, %v1126_v43  ;;  %v1145_v48 = vmul.f32 1.442695, %v1127_v44 }
 0x380   : > { %v1100_v49 = vpop.xlane.xlu0 %1099 }
 0x381   : > { %2353 = vpow2.f32 %v1143_v47  ;;  %v1128_v50 = vsub.f32 %v2695_v34, %v1100_v49 }
 0x382   : > { %2355 = vpow2.f32 %v1145_v48 }
 0x383   : > { %v1147_v51 = vmul.f32 1.442695, %v1128_v50 }
 0x384   : > { %v1102_v52 = vpop.xlane.xlu1 %1101  ;;  %v1104_v53 = vpop.xlane.xlu0 %1103 }
 0x385   : > { %2357 = vpow2.f32 %v1147_v51  ;;  %v1129_v17 = vsub.f32 %v2706_v45, %v1102_v52  ;;  %v1130_v54 = vsub.f32 %v2708_v46, %v1104_v53 }
 0x387   : > { %v1149_v55 = vmul.f32 1.442695, %v1129_v17  ;;  %v1151_v56 = vmul.f32 1.442695, %v1130_v54 }
 0x388   : > { %v1106_v24 = vpop.xlane.xlu1 %1105  ;;  %v1108_v59 = vpop.xlane.xlu0 %1107 }
 0x389   : > { %2359 = vpow2.f32 %v1149_v55  ;;  %v1131_v25 = vsub.f32 %v2720_v57, %v1106_v24  ;;  %v1132_v34 = vsub.f32 %v2722_v58, %v1108_v59 }
 0x38a   : > { %v2786_v60 = vpop.eup %2351  ;;  %2361 = vpow2.f32 %v1151_v56 }
 0x38b   : > { %v1153_v61 = vmul.f32 1.442695, %v1131_v25  ;;  %1173 = vadd.xlane.f32.xlu1 %v2786_v60  ;;  %v1155_v62 = vmul.f32 1.442695, %v1132_v34 }
 0x38c   : > { %v1110_v45 = vpop.xlane.xlu1 %1109  ;;  %v1112_v63 = vpop.xlane.xlu0 %1111 }
 0x38d   : > { %2363 = vpow2.f32 %v1153_v61  ;;  %v1133_v46 = vsub.f32 %v2734_v6, %v1110_v45  ;;  %v1134_v57 = vsub.f32 %v2736_v7, %v1112_v63 }
 0x38e   : > { %v2791_v0 = vpop.eup %2353  ;;  %2365 = vpow2.f32 %v1155_v62 }
 0x38f   : > { %v2794_v2 = vpop.eup %2355  ;;  %v1157_v3 = vmul.f32 1.442695, %v1133_v46  ;;  %1175 = vadd.xlane.f32.xlu0 %v2791_v0  ;;  %v1159_v58 = vmul.f32 1.442695, %v1134_v57 }
 0x390   : > { %1177 = vadd.xlane.f32.xlu1 %v2794_v2  ;;  %v1114_v4 = vpop.xlane.xlu1 %1113  ;;  %v1116_v8 = vpop.xlane.xlu0 %1115 }
 0x391   : > { %2367 = vpow2.f32 %v1157_v3  ;;  %v1135_v5 = vsub.f32 %v2748_v15, %v1114_v4  ;;  %v1136_v9 = vsub.f32 %v2750_v20, %v1116_v8 }
 0x392   : > { %v2799_v6 = vpop.eup %2357  ;;  %2369 = vpow2.f32 %v1159_v58 }
 0x393   : > { %v1161_v10 = vmul.f32 1.442695, %v1135_v5  ;;  %1179 = vadd.xlane.f32.xlu0 %v2799_v6  ;;  %v1163_v7 = vmul.f32 1.442695, %v1136_v9 }
 0x394   : > { %v1118_v11 = vpop.xlane.xlu1 %1117  ;;  %v1120_v13 = vpop.xlane.xlu0 %1119 }
 0x395   : > { %2371 = vpow2.f32 %v1161_v10  ;;  %v1137_v12 = vsub.f32 %v2761_v31, %v1118_v11  ;;  %v1138_v15 = vsub.f32 %v2763_v32, %v1120_v13 }
 0x396   : > { %v2804_v14 = vpop.eup %2359  ;;  %2373 = vpow2.f32 %v1163_v7 }
 0x397   : > { %v2807_v16 = vpop.eup %2361  ;;  %v1165_v18 = vmul.f32 1.442695, %v1137_v12  ;;  %1181 = vadd.xlane.f32.xlu1 %v2804_v14  ;;  %v1167_v19 = vmul.f32 1.442695, %v1138_v15 }
 0x398   : > { %1183 = vadd.xlane.f32.xlu0 %v2807_v16  ;;  %v1122_v20 = vpop.xlane.xlu1 %1121  ;;  %v1124_v22 = vpop.xlane.xlu0 %1123 }
 0x399   : > { %2375 = vpow2.f32 %v1165_v18  ;;  %v1139_v21 = vsub.f32 %v2773_v1, %v1122_v20  ;;  %v1140_v26 = vsub.f32 %v2775_v37, %v1124_v22 }
 0x39a   : > { %v2812_v23 = vpop.eup %2363  ;;  %2377 = vpow2.f32 %v1167_v19 }
 0x39b   : > { %v2815_v27 = vpop.eup %2365  ;;  %v1169_v28 = vmul.f32 1.442695, %v1139_v21  ;;  %1185 = vadd.xlane.f32.xlu1 %v2812_v23  ;;  %v1171_v29 = vmul.f32 1.442695, %v1140_v26 }
 0x39c   : > { %1187 = vadd.xlane.f32.xlu0 %v2815_v27 }
 0x39d   : > { %2379 = vpow2.f32 %v1169_v28 }
 0x39e   : > { %v2819_v30 = vpop.eup %2367  ;;  %2381 = vpow2.f32 %v1171_v29 }
 0x39f   : > { %v2821_v31 = vpop.eup %2369  ;;  %1189 = vadd.xlane.f32.xlu1 %v2819_v30 }
 0x3a0   : > { %1191 = vadd.xlane.f32.xlu0 %v2821_v31 }
 0x3a2   : > { %v2825_v32 = vpop.eup %2371 }
 0x3a3   : > { %v2827_v33 = vpop.eup %2373  ;;  %1193 = vadd.xlane.f32.xlu1 %v2825_v32 }
 0x3a4   : > { %1195 = vadd.xlane.f32.xlu0 %v2827_v33 }
 0x3a6   : > { %v2831_v35 = vpop.eup %2375 }
 0x3a7   : > { %v2833_v36 = vpop.eup %2377  ;;  %1197 = vadd.xlane.f32.xlu1 %v2831_v35 }
 0x3a8   : > { %1199 = vadd.xlane.f32.xlu0 %v2833_v36 }
 0x3aa   : > { %v2837_v1 = vpop.eup %2379 }
 0x3ab   : > { %v2839_v37 = vpop.eup %2381  ;;  %1201 = vadd.xlane.f32.xlu1 %v2837_v1 }
 0x3ac   : > { %1203 = vadd.xlane.f32.xlu0 %v2839_v37 }
 0x414   : > { %v1174_v38 = vpop.xlane.xlu1 %1173 }
 0x415   : > { %2383 = vrcp.f32 %v1174_v38 }
 0x418   : > { %v1176_v39 = vpop.xlane.xlu0 %1175 }
 0x419   : > { %v1178_v40 = vpop.xlane.xlu1 %1177  ;;  %2385 = vrcp.f32 %v1176_v39 }
 0x41a   : > { %2387 = vrcp.f32 %v1178_v40 }
 0x41c   : > { %v1180_v41 = vpop.xlane.xlu0 %1179 }
 0x41d   : > { %2389 = vrcp.f32 %v1180_v41 }
 0x420   : > { %v1182_v42 = vpop.xlane.xlu1 %1181 }
 0x421   : > { %2391 = vrcp.f32 %v1182_v42  ;;  %v1184_v43 = vpop.xlane.xlu0 %1183 }
 0x422   : > { %2393 = vrcp.f32 %v1184_v43  ;;  %v2384_v44 = vpop.eup %2383 }
 0x423   : > { %v1221_v50 = vmul.f32 %v2384_v44, %v2786_v60 }
 0x424   : > { %v1186_v47 = vpop.xlane.xlu1 %1185 }
 0x425   : > { %2395 = vrcp.f32 %v1186_v47  ;;  %v1188_v48 = vpop.xlane.xlu0 %1187 }
 0x426   : > { %v2386_v49 = vpop.eup %2385  ;;  %2397 = vrcp.f32 %v1188_v48 }
 0x427   : > { %v1222_v51 = vmul.f32 %v2386_v49, %v2791_v0  ;;  %v2388_v52 = vpop.eup %2387 }
 0x428   : > { %v1190_v17 = vpop.xlane.xlu1 %1189  ;;  %v1223_v56 = vmul.f32 %v2388_v52, %v2794_v2 }
 0x429   : > { %2399 = vrcp.f32 %v1190_v17  ;;  %v1192_v53 = vpop.xlane.xlu0 %1191  ;;  %v1237_v54 = vpack.c.bf16 %v1222_v51, %v1221_v50 }
 0x42a   : > { %v2390_v55 = vpop.eup %2389  ;;  %2401 = vrcp.f32 %v1192_v53 }
 0x42b   : > { %2262 = vmatprep.mubr.bf16.mxu0 %v1237_v54  ;;  %v1224_v24 = vmul.f32 %v2390_v55, %v2799_v6 }
 0x42c   : > { %v1194_v25 = vpop.xlane.xlu1 %1193 }
 0x42d   : > { %2403 = vrcp.f32 %v1194_v25  ;;  %v1196_v59 = vpop.xlane.xlu0 %1195  ;;  %v1238_v34 = vpack.c.bf16 %v1224_v24, %v1223_v56 }
 0x42e   : > { %v2392_v61 = vpop.eup %2391  ;;  %2405 = vrcp.f32 %v1196_v59 }
 0x42f   : > { %v2394_v60 = vpop.eup %2393  ;;  %2263 = vmatmul.mubr.bf16.vlgmr.msra.gmra.mxu0 %v1238_v34  ;;  %v1225_v62 = vmul.f32 %v2392_v61, %v2804_v14 }
 0x430   : > { %v1198_v45 = vpop.xlane.xlu1 %1197  ;;  %v1226_v46 = vmul.f32 %v2394_v60, %v2807_v16 }
 0x431   : > { %2407 = vrcp.f32 %v1198_v45  ;;  %v1200_v63 = vpop.xlane.xlu0 %1199 }
 0x432   : > { %v2396_v0 = vpop.eup %2395  ;;  %2409 = vrcp.f32 %v1200_v63  ;;  %v1239_v57 = vpack.c.bf16 %v1226_v46, %v1225_v62 }
 0x433   : > { %v2398_v2 = vpop.eup %2397  ;;  %v1227_v3 = vmul.f32 %v2396_v0, %v2812_v23 }
 0x434   : > { %2266 = vmatprep.mubr.bf16.mxu0 %v1239_v57  ;;  %v1202_v58 = vpop.xlane.xlu1 %1201  ;;  %v1228_v4 = vmul.f32 %v2398_v2, %v2815_v27 }
 0x435   : > { %2411 = vrcp.f32 %v1202_v58  ;;  %v1204_v5 = vpop.xlane.xlu0 %1203 }
 0x436   : > { %v2400_v8 = vpop.eup %2399  ;;  %2413 = vrcp.f32 %v1204_v5  ;;  %v1240_v6 = vpack.c.bf16 %v1228_v4, %v1227_v3 }
 0x437   : > { %v2402_v9 = vpop.eup %2401  ;;  %v1229_v10 = vmul.f32 %v2400_v8, %v2819_v30  ;;  %v2347_v30 = vld [vmem:[%s3161_s7 + $0x8] sm:$0xff]  }
 0x438   : > { %2267 = vmatmul.mubr.bf16.gmra.mxu0 %v1240_v6  ;;  %v1230_v7 = vmul.f32 %v2402_v9, %v2821_v31  ;;  %2278 = vmatprep.subr.bf16.mxu1 %v2347_v30  ;;  %v2348_v31 = vld [vmem:[%s3161_s7] sm:$0xff]  }
 0x439   : > { %2279 = vmatpush3.bf16.msra.mxu1 %v2347_v30 }
 0x43a   : > { %v2404_v11 = vpop.eup %2403  ;;  %v1241_v12 = vpack.c.bf16 %v1230_v7, %v1229_v10  ;;  %2280 = vmatprep.subr.bf16.mxu1 %v2348_v31 }
 0x43b   : > { %v2406_v13 = vpop.eup %2405  ;;  %v1231_v14 = vmul.f32 %v2404_v11, %v2825_v32  ;;  %v2349_v32 = vld [vmem:[%s3163_s9 + $0x8] sm:$0xff]  }
 0x43c   : > { %2270 = vmatprep.mubr.bf16.mxu0 %v1241_v12  ;;  %v1232_v15 = vmul.f32 %v2406_v13, %v2827_v33  ;;  %v2350_v33 = vld [vmem:[%s3163_s9] sm:$0xff]   ;;  %2298 = vmatprep.subr.bf16.mxu0 %v2349_v32 }
 0x43d   : > { %2281 = vmatpush3.bf16.msra.mxu1 %v2348_v31  ;;  %2299 = vmatpush3.bf16.msra.mxu0 %v2349_v32 }
 0x43e   : > { %v2408_v16 = vpop.eup %2407  ;;  %v1242_v18 = vpack.c.bf16 %v1232_v15, %v1231_v14  ;;  %2300 = vmatprep.subr.bf16.mxu0 %v2350_v33 }
 0x43f   : > { %v2410_v19 = vpop.eup %2409  ;;  %v1233_v20 = vmul.f32 %v2408_v16, %v2831_v35 }
 0x440   : > { %2271 = vmatmul.mubr.bf16.gmra.mxu0 %v1242_v18  ;;  %v1234_v21 = vmul.f32 %v2410_v19, %v2833_v36 }
 0x441   : > { %2301 = vmatpush3.bf16.msra.mxu0 %v2350_v33 }
 0x442   : > { %v2412_v22 = vpop.eup %2411  ;;  %v1243_v23 = vpack.c.bf16 %v1234_v21, %v1233_v20 }
 0x443   : > { %v2414_v26 = vpop.eup %2413  ;;  %v1235_v27 = vmul.f32 %v2412_v22, %v2837_v1 }
 0x444   : > { %2274 = vmatprep.mubr.bf16.mxu0 %v1243_v23  ;;  %v1236_v28 = vmul.f32 %v2414_v26, %v2839_v37 }
 0x446   : > { %v1244_v29 = vpack.c.bf16 %v1236_v28, %v1235_v27 }
 0x448   : > { %2275 = vmatmul.mubr.bf16.gmra.mxu0 %v1244_v29 }
 0x4ef   : > { %v2871_v35 = vpop.f32.mrf.mxu0 }
 0x4f0   : > { %v1360_v36 = vmin.f32 %v2871_v35, 0.0  ;;  %vm1344_vm7 = vcmp.gt.f32.partialorder %v2871_v35, 0.0 }
 0x4f1   : > { %v1279_v1 = vpop.f32.mrf.mxu0 }
 0x4f2   : > { %v1358_v37 = vmin.f32 %v1279_v1, 0.0  ;;  %v1378_v38 = vmul.f32 1.442695, %v1360_v36  ;;  %vm1342_vm4 = vcmp.gt.f32.partialorder %v1279_v1, 0.0 }
 0x4f3   : > { %v2265_v39 = vpop.f32.mrf.mxu0 }
 0x4f4   : > { %v1374_v40 = vmul.f32 1.442695, %v1358_v37  ;;  %v1361_v41 = vmin.f32 %v2265_v39, 0.0  ;;  %vm1345_vm5 = vcmp.gt.f32.partialorder %v2265_v39, 0.0 }
 0x4f5   : > { %v1282_v42 = vpop.f32.mrf.mxu0 }
 0x4f6   : > { %2415 = vpow2.f32 %v1374_v40  ;;  %v1380_v43 = vmul.f32 1.442695, %v1361_v41  ;;  %v1359_v44 = vmin.f32 %v1282_v42, 0.0  ;;  %vm1343_vm6 = vcmp.gt.f32.partialorder %v1282_v42, 0.0 }
 0x4f7   : > { %2417 = vpow2.f32 %v1378_v38 }
 0x4f8   : > { %2419 = vpow2.f32 %v1380_v43  ;;  %v1376_v47 = vmul.f32 1.442695, %v1359_v44  ;;  %v2874_v48 = vpop.f32.mrf.mxu0 }
 0x4f9   : > { %v1364_v49 = vmin.f32 %v2874_v48, 0.0  ;;  %vm1348_vm11 = vcmp.gt.f32.partialorder %v2874_v48, 0.0 }
 0x4fa   : > { %2421 = vpow2.f32 %v1376_v47  ;;  %v2877_v50 = vpop.f32.mrf.mxu0 }
 0x4fb   : > { %v1362_v51 = vmin.f32 %v2877_v50, 0.0  ;;  %v1386_v52 = vmul.f32 1.442695, %v1364_v49  ;;  %vm1346_vm9 = vcmp.gt.f32.partialorder %v2877_v50, 0.0 }
 0x4fc   : > { %v2880_v17 = vpop.f32.mrf.mxu0 }
 0x4fd   : > { %v1382_v53 = vmul.f32 1.442695, %v1362_v51  ;;  %v1365_v54 = vmin.f32 %v2880_v17, 0.0  ;;  %vm1349_vm8 = vcmp.gt.f32.partialorder %v2880_v17, 0.0 }
 0x4fe   : > { %v2883_v55 = vpop.f32.mrf.mxu0 }
 0x4ff   : > { %2423 = vpow2.f32 %v1382_v53  ;;  %v1388_v56 = vmul.f32 1.442695, %v1365_v54  ;;  %v1363_v24 = vmin.f32 %v2883_v55, 0.0  ;;  %vm1347_vm10 = vcmp.gt.f32.partialorder %v2883_v55, 0.0 }
 0x500   : > { %2425 = vpow2.f32 %v1386_v52  ;;  %v2886_v25 = vpop.f32.mrf.mxu0 }
 0x501   : > { %2427 = vpow2.f32 %v1388_v56  ;;  %v1384_v59 = vmul.f32 1.442695, %v1363_v24  ;;  %v1368_v34 = vmin.f32 %v2886_v25, 0.0  ;;  %vm1352_vm15 = vcmp.gt.f32.partialorder %v2886_v25, 0.0 }
 0x502   : > { %v2889_v61 = vpop.f32.mrf.mxu0 }
 0x503   : > { %v2416_v60 = vpop.eup %2415  ;;  %2429 = vpow2.f32 %v1384_v59  ;;  %v1366_v62 = vmin.f32 %v2889_v61, 0.0  ;;  %v1394_v46 = vmul.f32 1.442695, %v1368_v34  ;;  %vm1350_vm13 = vcmp.gt.f32.partialorder %v2889_v61, 0.0 }
 0x504   : > { %v2418_v45 = vpop.eup %2417  ;;  %v2892_v63 = vpop.f32.mrf.mxu0  ;;  %v2052_v3 = vadd.f32 -1.0, %v2416_v60 }
 0x505   : > { %v2420_v0 = vpop.eup %2419  ;;  %v1390_v57 = vmul.f32 1.442695, %v1366_v62  ;;  %v1369_v2 = vmin.f32 %v2892_v63, 0.0  ;;  %v2054_v8 = vadd.f32 -1.0, %v2418_v45  ;;  %vm1353_vm12 = vcmp.gt.f32.partialorder %v2892_v63, 0.0 }
 0x506   : > { %v2055_v58 = vadd.f32 -1.0, %v2420_v0  ;;  %v2895_v4 = vpop.f32.mrf.mxu0  ;;  %v1422_v13 = vsel %vm1342_vm4, %v1279_v1, %v2052_v3 }
 0x507   : > { %v2422_v5 = vpop.eup %2421  ;;  %2431 = vpow2.f32 %v1390_v57  ;;  %v1396_v6 = vmul.f32 1.442695, %v1369_v2  ;;  %v1367_v9 = vmin.f32 %v2895_v4, 0.0  ;;  %v1424_v18 = vsel %vm1344_vm7, %v2871_v35, %v2054_v8 }
 0x508   : > { %v2053_v10 = vadd.f32 -1.0, %v2422_v5  ;;  %2433 = vpow2.f32 %v1394_v46  ;;  %v2898_v7 = vpop.f32.mrf.mxu0  ;;  %v1425_v11 = vsel %vm1345_vm5, %v2265_v39, %v2055_v58  ;;  %vm1351_vm14 = vcmp.gt.f32.partialorder %v2895_v4, 0.0 }
 0x509   : > { %2435 = vpow2.f32 %v1396_v6  ;;  %v1392_v12 = vmul.f32 1.442695, %v1367_v9  ;;  %v1372_v15 = vmin.f32 %v2898_v7, 0.0  ;;  %v1439_v21 = vpack.c.bf16 %v1425_v11, %v1424_v18 }
 0x50a   : > { %v1423_v14 = vsel %vm1343_vm6, %v1282_v42, %v2053_v10  ;;  %v2902_v16 = vpop.f32.mrf.mxu0  ;;  %vm1356_vm5 = vcmp.gt.f32.partialorder %v2898_v7, 0.0  ;;  %v2068_v10 = vld [vmem:[%s3162_s8] ss:$0 sm:$0xff] }
 0x50b   : > { %v1438_v19 = vpack.c.bf16 %v1423_v14, %v1422_v13  ;;  %2437 = vpow2.f32 %v1392_v12  ;;  %v1402_v22 = vmul.f32 1.442695, %v1372_v15  ;;  %v1370_v23 = vmin.f32 %v2902_v16, 0.0 }
 0x50c   : > { %v2424_v20 = vpop.eup %2423  ;;  %v2906_v26 = vpop.f32.mrf.mxu0  ;;  %vm1354_vm3 = vcmp.gt.f32.partialorder %v2902_v16, 0.0 }
 0x50d   : > { %v2426_v27 = vpop.eup %2425  ;;  %v1373_v28 = vmin.f32 %v2906_v26, 0.0  ;;  %2282 = vmatprep.mubr.msk.bf16.mxu1 %vm634_vm2, %v1438_v19  ;;  %v1398_v30 = vmul.f32 1.442695, %v1370_v23  ;;  %v2056_v32 = vadd.f32 -1.0, %v2424_v20  ;;  %2439 = vpow2.f32 %v1402_v22 }
 0x50e   : > { %v2428_v29 = vpop.eup %2427  ;;  %v1330_v31 = vpop.f32.mrf.mxu0  ;;  %2283 = vmatmul.mubr.msk.bf16.vlgmr.msra.gmra.mxu1 %vm634_vm2, %v1439_v21  ;;  %v2058_v1 = vadd.f32 -1.0, %v2426_v27  ;;  %vm1357_vm0 = vcmp.gt.f32.partialorder %v2906_v26, 0.0 }
 0x50f   : > { %v2059_v33 = vadd.f32 -1.0, %v2428_v29  ;;  %v1404_v35 = vmul.f32 1.442695, %v1373_v28  ;;  %2441 = vpow2.f32 %v1398_v30  ;;  %v1371_v37 = vmin.f32 %v1330_v31, 0.0 }
 0x510   : > { %v2430_v36 = vpop.eup %2429  ;;  %v1426_v41 = vsel %vm1346_vm9, %v2877_v50, %v2056_v32  ;;  %v1428_v44 = vsel %vm1348_vm11, %v2874_v48, %v2058_v1  ;;  %vm1355_vm4 = vcmp.gt.f32.partialorder %v1330_v31, 0.0 }
 0x511   : > { %v2057_v38 = vadd.f32 -1.0, %v2430_v36  ;;  %2443 = vpow2.f32 %v1404_v35  ;;  %v1429_v39 = vsel %vm1349_vm8, %v2880_v17, %v2059_v33  ;;  %v1400_v40 = vmul.f32 1.442695, %v1371_v37 }
 0x512   : > { %v1441_v51 = vpack.c.bf16 %v1429_v39, %v1428_v44 }
 0x513   : > { %v1427_v42 = vsel %vm1347_vm10, %v2883_v55, %v2057_v38  ;;  %2445 = vpow2.f32 %v1400_v40 }
 0x514   : > { %v2432_v43 = vpop.eup %2431  ;;  %v1440_v47 = vpack.c.bf16 %v1427_v42, %v1426_v41 }
 0x515   : > { %v2434_v49 = vpop.eup %2433  ;;  %v2060_v17 = vadd.f32 -1.0, %v2432_v43 }
 0x516   : > { %v2436_v52 = vpop.eup %2435  ;;  %2286 = vmatprep.mubr.msk.bf16.mxu1 %vm634_vm2, %v1440_v47  ;;  %v2062_v56 = vadd.f32 -1.0, %v2434_v49 }
 0x517   : > { %v2063_v53 = vadd.f32 -1.0, %v2436_v52  ;;  %2287 = vmatmul.mubr.msk.bf16.gmra.mxu1 %vm634_vm2, %v1441_v51  ;;  %v1430_v55 = vsel %vm1350_vm13, %v2889_v61, %v2060_v17 }
 0x518   : > { %v2438_v54 = vpop.eup %2437  ;;  %v1432_v34 = vsel %vm1352_vm15, %v2886_v25, %v2062_v56 }
 0x519   : > { %v2061_v50 = vadd.f32 -1.0, %v2438_v54  ;;  %v1433_v48 = vsel %vm1353_vm12, %v2892_v63, %v2063_v53 }
 0x51a   : > { %v2440_v59 = vpop.eup %2439  ;;  %v1443_v45 = vpack.c.bf16 %v1433_v48, %v1432_v34 }
 0x51b   : > { %v1431_v24 = vsel %vm1351_vm14, %v2895_v4, %v2061_v50  ;;  %v2066_v2 = vadd.f32 -1.0, %v2440_v59 }
 0x51c   : > { %v1442_v60 = vpack.c.bf16 %v1431_v24, %v1430_v55  ;;  %v2442_v62 = vpop.eup %2441 }
 0x51d   : > { %v2064_v63 = vadd.f32 -1.0, %v2442_v62  ;;  %v1436_v4 = vsel %vm1356_vm5, %v2898_v7, %v2066_v2 }
 0x51e   : > { %v2444_v46 = vpop.eup %2443  ;;  %2290 = vmatprep.mubr.msk.bf16.mxu1 %vm634_vm2, %v1442_v60 }
 0x51f   : > { %v2067_v0 = vadd.f32 -1.0, %v2444_v46  ;;  %2291 = vmatmul.mubr.msk.bf16.gmra.mxu1 %vm634_vm2, %v1443_v45  ;;  %v1434_v25 = vsel %vm1354_vm3, %v2902_v16, %v2064_v63 }
 0x520   : > { %v2446_v57 = vpop.eup %2445 }
 0x521   : > { %v2065_v61 = vadd.f32 -1.0, %v2446_v57  ;;  %v1437_v3 = vsel %vm1357_vm0, %v2906_v26, %v2067_v0 }
 0x522   : > { %v1445_v8 = vpack.c.bf16 %v1437_v3, %v1436_v4 }
 0x523   : > { %v1435_v58 = vsel %vm1355_vm4, %v1330_v31, %v2065_v61  ;;  %v2079_v61 = vld [vmem:[%s3164_s10] ss:$0 sm:$0xff] }
 0x524   : > { %v1444_v5 = vpack.c.bf16 %v1435_v58, %v1434_v25 }
 0x526   : > { %2294 = vmatprep.mubr.msk.bf16.mxu1 %vm634_vm2, %v1444_v5 }
 0x527   : > { %2295 = vmatmul.mubr.msk.bf16.gmra.mxu1 %vm634_vm2, %v1445_v8 }
 0x5ce   : > { %v2284_v6 = vpop.f32.mrf.mxu1 }
 0x5cf   : > { %v1536_v14 = vadd.f32 %v2284_v6, %v2068_v10 }
 0x5d0   : > { %v1527_v9 = vpop.f32.mrf.mxu1 }
 0x5d1   : > { %v1528_v12 = vadd.f32 %v2068_v10, %v1527_v9  ;;  %v1592_v21 = vmax.f32 %v1536_v14, 0.0 }
 0x5d2   : > { %v2285_v11 = vpop.f32.mrf.mxu1 }
 0x5d3   : > { %v1539_v13 = vadd.f32 %v2285_v11, %v2068_v10  ;;  %v1590_v7 = vmax.f32 %v1528_v12, 0.0 }
 0x5d4   : > { %v1530_v15 = vpop.f32.mrf.mxu1 }
 0x5d5   : > { %v1531_v16 = vadd.f32 %v2068_v10, %v1530_v15  ;;  %v1593_v18 = vmax.f32 %v1539_v13, 0.0 }
 0x5d7   : > { %v1591_v19 = vmax.f32 %v1531_v16, 0.0  ;;  %v2288_v20 = vpop.f32.mrf.mxu1  ;;  %v1607_v26 = vpack.c.bf16 %v1593_v18, %v1592_v21 }
 0x5d8   : > { %v1552_v30 = vadd.f32 %v2288_v20, %v2068_v10 }
 0x5d9   : > { %v1606_v22 = vpack.c.bf16 %v1591_v19, %v1590_v7  ;;  %v1543_v23 = vpop.f32.mrf.mxu1 }
 0x5da   : > { %v1544_v28 = vadd.f32 %v2068_v10, %v1543_v23  ;;  %v1596_v37 = vmax.f32 %v1552_v30, 0.0 }
 0x5db   : > { %v2289_v27 = vpop.f32.mrf.mxu1  ;;  %2302 = vmatprep.mubr.msk.bf16.mxu0 %vm634_vm2, %v1606_v22 }
 0x5dc   : > { %v1555_v29 = vadd.f32 %v2289_v27, %v2068_v10  ;;  %2303 = vmatmul.mubr.msk.bf16.vlgmr.msra.gmra.mxu0 %vm634_vm2, %v1607_v26  ;;  %v1594_v36 = vmax.f32 %v1544_v28, 0.0 }
 0x5dd   : > { %v1546_v31 = vpop.f32.mrf.mxu1 }
 0x5de   : > { %v1547_v32 = vadd.f32 %v2068_v10, %v1546_v31  ;;  %v1597_v33 = vmax.f32 %v1555_v29, 0.0 }
 0x5df   : > { %v2292_v35 = vpop.f32.mrf.mxu1 }
 0x5e0   : > { %v1595_v1 = vmax.f32 %v1547_v32, 0.0  ;;  %v1609_v40 = vpack.c.bf16 %v1597_v33, %v1596_v37  ;;  %v1568_v44 = vadd.f32 %v2292_v35, %v2068_v10 }
 0x5e1   : > { %v1559_v38 = vpop.f32.mrf.mxu1 }
 0x5e2   : > { %v1608_v39 = vpack.c.bf16 %v1595_v1, %v1594_v36  ;;  %v1560_v42 = vadd.f32 %v2068_v10, %v1559_v38  ;;  %v1600_v54 = vmax.f32 %v1568_v44, 0.0 }
 0x5e3   : > { %v2293_v41 = vpop.f32.mrf.mxu1 }
 0x5e4   : > { %v1571_v43 = vadd.f32 %v2293_v41, %v2068_v10  ;;  %2306 = vmatprep.mubr.msk.bf16.mxu0 %vm634_vm2, %v1608_v39  ;;  %v1598_v52 = vmax.f32 %v1560_v42, 0.0 }
 0x5e5   : > { %v1562_v47 = vpop.f32.mrf.mxu1  ;;  %2307 = vmatmul.mubr.msk.bf16.gmra.mxu0 %vm634_vm2, %v1609_v40 }
 0x5e6   : > { %v1563_v49 = vadd.f32 %v2068_v10, %v1562_v47  ;;  %v1601_v51 = vmax.f32 %v1571_v43, 0.0 }
 0x5e7   : > { %v2296_v53 = vpop.f32.mrf.mxu1 }
 0x5e8   : > { %v1599_v17 = vmax.f32 %v1563_v49, 0.0  ;;  %v1611_v48 = vpack.c.bf16 %v1601_v51, %v1600_v54  ;;  %v1584_v34 = vadd.f32 %v2296_v53, %v2068_v10 }
 0x5e9   : > { %v1575_v50 = vpop.f32.mrf.mxu1 }
 0x5ea   : > { %v1610_v56 = vpack.c.bf16 %v1599_v17, %v1598_v52  ;;  %v1576_v24 = vadd.f32 %v2068_v10, %v1575_v50  ;;  %v1604_v63 = vmax.f32 %v1584_v34, 0.0 }
 0x5eb   : > { %v2297_v55 = vpop.f32.mrf.mxu1 }
 0x5ec   : > { %2310 = vmatprep.mubr.msk.bf16.mxu0 %vm634_vm2, %v1610_v56  ;;  %v1587_v59 = vadd.f32 %v2297_v55, %v2068_v10  ;;  %v1602_v46 = vmax.f32 %v1576_v24, 0.0 }
 0x5ed   : > { %2311 = vmatmul.mubr.msk.bf16.gmra.mxu0 %vm634_vm2, %v1611_v48  ;;  %v1578_v60 = vpop.f32.mrf.mxu1 }
 0x5ee   : > { %v1579_v62 = vadd.f32 %v2068_v10, %v1578_v60  ;;  %v1605_v45 = vmax.f32 %v1587_v59, 0.0 }
 0x5f0   : > { %v1603_v0 = vmax.f32 %v1579_v62, 0.0  ;;  %v1613_v2 = vpack.c.bf16 %v1605_v45, %v1604_v63 }
 0x5f2   : > { %v1612_v57 = vpack.c.bf16 %v1603_v0, %v1602_v46 }
 0x5f4   : > { %2314 = vmatprep.mubr.msk.bf16.mxu0 %vm634_vm2, %v1612_v57 }
 0x5f5   : > { %2315 = vmatmul.mubr.msk.bf16.gmra.mxu0 %vm634_vm2, %v1613_v2 }
 0x69c   : > { %v2304_v3 = vpop.f32.mrf.mxu0 }
 0x69d   : > { %v2953_v25 = vadd.f32 %v2304_v3, %v2079_v61 }
 0x69e   : > { %v1695_v58 = vpop.f32.mrf.mxu0 }
 0x69f   : > { %v2955_v4 = vadd.f32 %v2079_v61, %v1695_v58  ;;  %v1764_v5 = vsel %vm468_vm1, %v2953_v25, -inf }
 0x6a0   : > { %1765 = vmax.xlane.f32.xlu1 %v1764_v5  ;;  %v2305_v8 = vpop.f32.mrf.mxu0 }
 0x6a1   : > { %v2959_v6 = vadd.f32 %v2305_v8, %v2079_v61  ;;  %v1758_v12 = vsel %vm468_vm1, %v2955_v4, -inf }
 0x6a2   : > { %v1698_v9 = vpop.f32.mrf.mxu0 }
 0x6a3   : > { %v2961_v10 = vadd.f32 %v2079_v61, %v1698_v9  ;;  %v1767_v11 = vsel %vm468_vm1, %v2959_v6, -inf }
 0x6a4   : > { %1768 = vmax.xlane.f32.xlu0 %v1767_v11  ;;  %1759 = vmax.xlane.f32.xlu1 %v1758_v12 }
 0x6a5   : > { %v2308_v13 = vpop.f32.mrf.mxu0  ;;  %v1761_v16 = vsel %vm468_vm1, %v2961_v10, -inf }
 0x6a6   : > { %v2967_v14 = vadd.f32 %v2308_v13, %v2079_v61 }
 0x6a7   : > { %v1711_v15 = vpop.f32.mrf.mxu0 }
 0x6a8   : > { %v2971_v18 = vadd.f32 %v2079_v61, %v1711_v15  ;;  %1762 = vmax.xlane.f32.xlu0 %v1761_v16  ;;  %v1776_v7 = vsel %vm468_vm1, %v2967_v14, -inf }
 0x6a9   : > { %v2309_v19 = vpop.f32.mrf.mxu0  ;;  %1777 = vmax.xlane.f32.xlu1 %v1776_v7 }
 0x6aa   : > { %v2975_v20 = vadd.f32 %v2309_v19, %v2079_v61  ;;  %v1770_v26 = vsel %vm468_vm1, %v2971_v18, -inf }
 0x6ab   : > { %v1714_v21 = vpop.f32.mrf.mxu0 }
 0x6ac   : > { %v2977_v22 = vadd.f32 %v2079_v61, %v1714_v21  ;;  %v1779_v23 = vsel %vm468_vm1, %v2975_v20, -inf }
 0x6ad   : > { %v2312_v27 = vpop.f32.mrf.mxu0  ;;  %1780 = vmax.xlane.f32.xlu0 %v1779_v23  ;;  %1771 = vmax.xlane.f32.xlu1 %v1770_v26 }
 0x6ae   : > { %v2983_v28 = vadd.f32 %v2312_v27, %v2079_v61  ;;  %v1773_v31 = vsel %vm468_vm1, %v2977_v22, -inf }
 0x6af   : > { %v1727_v29 = vpop.f32.mrf.mxu0 }
 0x6b0   : > { %v2985_v30 = vadd.f32 %v2079_v61, %v1727_v29  ;;  %v1788_v32 = vsel %vm468_vm1, %v2983_v28, -inf }
 0x6b1   : > { %v2313_v33 = vpop.f32.mrf.mxu0  ;;  %1774 = vmax.xlane.f32.xlu0 %v1773_v31  ;;  %1789 = vmax.xlane.f32.xlu1 %v1788_v32 }
 0x6b2   : > { %v2991_v35 = vadd.f32 %v2313_v33, %v2079_v61  ;;  %v1782_v38 = vsel %vm468_vm1, %v2985_v30, -inf }
 0x6b3   : > { %v1730_v36 = vpop.f32.mrf.mxu0 }
 0x6b4   : > { %v2993_v1 = vadd.f32 %v2079_v61, %v1730_v36  ;;  %v1791_v37 = vsel %vm468_vm1, %v2991_v35, -inf }
 0x6b5   : > { %1792 = vmax.xlane.f32.xlu0 %v1791_v37  ;;  %1783 = vmax.xlane.f32.xlu1 %v1782_v38  ;;  %v2316_v39 = vpop.f32.mrf.mxu0 }
 0x6b6   : > { %v1785_v41 = vsel %vm468_vm1, %v2993_v1, -inf  ;;  %v3003_v44 = vadd.f32 %v2316_v39, %v2079_v61 }
 0x6b7   : > { %v1743_v40 = vpop.f32.mrf.mxu0 }
 0x6b8   : > { %v3001_v42 = vadd.f32 %v2079_v61, %v1743_v40  ;;  %v1800_v53 = vsel %vm468_vm1, %v3003_v44, -inf }
 0x6b9   : > { %1786 = vmax.xlane.f32.xlu0 %v1785_v41  ;;  %v2317_v43 = vpop.f32.mrf.mxu0 }
 0x6ba   : > { %v1794_v47 = vsel %vm468_vm1, %v3001_v42, -inf  ;;  %v3009_v52 = vadd.f32 %v2317_v43, %v2079_v61 }
 0x6bb   : > { %v1746_v49 = vpop.f32.mrf.mxu0  ;;  %1795 = vmax.xlane.f32.xlu1 %v1794_v47 }
 0x6bc   : > { %v3007_v51 = vadd.f32 %v2079_v61, %v1746_v49  ;;  %v1803_v54 = vsel %vm468_vm1, %v3009_v52, -inf }
 0x6be   : > { %v1797_v17 = vsel %vm468_vm1, %v3007_v51, -inf }
 0x6bf   : > { %1798 = vmax.xlane.f32.xlu0 %v1797_v17  ;;  %1801 = vmax.xlane.f32.xlu1 %v1800_v53 }
 0x6c3   : > { %1804 = vmax.xlane.f32.xlu0 %v1803_v54 }
 0x729   : > { %v1766_v56 = vpop.xlane.xlu1 %1765 }
 0x72a   : > { %v1808_v50 = vsub.f32 %v2953_v25, %v1766_v56 }
 0x72c   : > { %v1826_v48 = vmul.f32 1.442695, %v1808_v50 }
 0x72d   : > { %v1769_v55 = vpop.xlane.xlu0 %1768  ;;  %v1760_v24 = vpop.xlane.xlu1 %1759 }
 0x72e   : > { %2447 = vpow2.f32 %v1826_v48  ;;  %v1809_v59 = vsub.f32 %v2959_v6, %v1769_v55  ;;  %v1806_v34 = vsub.f32 %v2955_v4, %v1760_v24 }
 0x730   : > { %v1828_v60 = vmul.f32 1.442695, %v1809_v59  ;;  %v1822_v62 = vmul.f32 1.442695, %v1806_v34 }
 0x731   : > { %v1763_v45 = vpop.xlane.xlu0 %1762 }
 0x732   : > { %2449 = vpow2.f32 %v1828_v60  ;;  %v1807_v46 = vsub.f32 %v2961_v10, %v1763_v45  ;;  %v1778_v0 = vpop.xlane.xlu1 %1777 }
 0x733   : > { %2451 = vpow2.f32 %v1822_v62  ;;  %v1812_v63 = vsub.f32 %v2967_v14, %v1778_v0 }
 0x734   : > { %v1824_v57 = vmul.f32 1.442695, %v1807_v46 }
 0x735   : > { %v1834_v2 = vmul.f32 1.442695, %v1812_v63 }
 0x736   : > { %2453 = vpow2.f32 %v1824_v57  ;;  %v1781_v61 = vpop.xlane.xlu0 %1780  ;;  %v1772_v3 = vpop.xlane.xlu1 %1771 }
 0x737   : > { %2455 = vpow2.f32 %v1834_v2  ;;  %v1813_v25 = vsub.f32 %v2975_v20, %v1781_v61  ;;  %v1810_v58 = vsub.f32 %v2971_v18, %v1772_v3 }
 0x739   : > { %v1836_v4 = vmul.f32 1.442695, %v1813_v25  ;;  %v1830_v5 = vmul.f32 1.442695, %v1810_v58 }
 0x73a   : > { %v1775_v8 = vpop.xlane.xlu0 %1774  ;;  %v1790_v6 = vpop.xlane.xlu1 %1789 }
 0x73b   : > { %v3024_v9 = vpop.eup %2447  ;;  %2457 = vpow2.f32 %v1836_v4  ;;  %v1811_v10 = vsub.f32 %v2977_v22, %v1775_v8  ;;  %v1816_v11 = vsub.f32 %v2983_v28, %v1790_v6 }
 0x73c   : > { %2459 = vpow2.f32 %v1830_v5  ;;  %v1860_v12 = vsel %vm468_vm1, %v3024_v9, 0.0 }
 0x73d   : > { %v1832_v13 = vmul.f32 1.442695, %v1811_v10  ;;  %v1842_v14 = vmul.f32 1.442695, %v1816_v11  ;;  %1861 = vadd.xlane.f32.xlu1 %v1860_v12 }
 0x73e   : > { %v1793_v15 = vpop.xlane.xlu0 %1792  ;;  %v1784_v16 = vpop.xlane.xlu1 %1783 }
 0x73f   : > { %v3030_v18 = vpop.eup %2449  ;;  %2461 = vpow2.f32 %v1832_v13  ;;  %v1817_v7 = vsub.f32 %v2991_v35, %v1793_v15  ;;  %v1814_v19 = vsub.f32 %v2985_v30, %v1784_v16 }
 0x740   : > { %v3034_v20 = vpop.eup %2451  ;;  %2463 = vpow2.f32 %v1842_v14  ;;  %v1863_v21 = vsel %vm468_vm1, %v3030_v18, 0.0 }
 0x741   : > { %v1844_v22 = vmul.f32 1.442695, %v1817_v7  ;;  %v1838_v23 = vmul.f32 1.442695, %v1814_v19  ;;  %1864 = vadd.xlane.f32.xlu0 %v1863_v21  ;;  %v1854_v26 = vsel %vm468_vm1, %v3034_v20, 0.0 }
 0x742   : > { %v1787_v27 = vpop.xlane.xlu0 %1786  ;;  %1855 = vadd.xlane.f32.xlu1 %v1854_v26 }
 0x743   : > { %v3040_v28 = vpop.eup %2453  ;;  %2465 = vpow2.f32 %v1844_v22  ;;  %v1815_v29 = vsub.f32 %v2993_v1, %v1787_v27 }
 0x744   : > { %v3043_v30 = vpop.eup %2455  ;;  %2467 = vpow2.f32 %v1838_v23  ;;  %v1857_v31 = vsel %vm468_vm1, %v3040_v28, 0.0  ;;  %v1796_v33 = vpop.xlane.xlu1 %1795 }
 0x745   : > { %v1840_v32 = vmul.f32 1.442695, %v1815_v29  ;;  %1858 = vadd.xlane.f32.xlu0 %v1857_v31  ;;  %v1872_v35 = vsel %vm468_vm1, %v3043_v30, 0.0  ;;  %v1818_v36 = vsub.f32 %v3001_v42, %v1796_v33 }
 0x746   : > { %1873 = vadd.xlane.f32.xlu1 %v1872_v35 }
 0x747   : > { %2469 = vpow2.f32 %v1840_v32  ;;  %v1846_v38 = vmul.f32 1.442695, %v1818_v36 }
 0x748   : > { %v3050_v37 = vpop.eup %2457  ;;  %v1799_v39 = vpop.xlane.xlu0 %1798 }
 0x749   : > { %v3052_v1 = vpop.eup %2459  ;;  %v1802_v40 = vpop.xlane.xlu1 %1801  ;;  %v1875_v41 = vsel %vm468_vm1, %v3050_v37, 0.0  ;;  %2471 = vpow2.f32 %v1846_v38  ;;  %v1819_v43 = vsub.f32 %v3007_v51, %v1799_v39 }
 0x74a   : > { %v1820_v47 = vsub.f32 %v3003_v44, %v1802_v40  ;;  %1876 = vadd.xlane.f32.xlu0 %v1875_v41  ;;  %v1866_v42 = vsel %vm468_vm1, %v3052_v1, 0.0 }
 0x74b   : > { %1867 = vadd.xlane.f32.xlu1 %v1866_v42  ;;  %v1848_v17 = vmul.f32 1.442695, %v1819_v43 }
 0x74c   : > { %v3060_v49 = vpop.eup %2461  ;;  %v1850_v53 = vmul.f32 1.442695, %v1820_v47  ;;  %v1805_v56 = vpop.xlane.xlu0 %1804 }
 0x74d   : > { %v3062_v54 = vpop.eup %2463  ;;  %v1869_v50 = vsel %vm468_vm1, %v3060_v49, 0.0  ;;  %2473 = vpow2.f32 %v1848_v17  ;;  %v1821_v51 = vsub.f32 %v3009_v52, %v1805_v56 }
 0x74e   : > { %1870 = vadd.xlane.f32.xlu0 %v1869_v50  ;;  %v1884_v44 = vsel %vm468_vm1, %v3062_v54, 0.0  ;;  %2475 = vpow2.f32 %v1850_v53 }
 0x74f   : > { %1885 = vadd.xlane.f32.xlu1 %v1884_v44  ;;  %v1852_v55 = vmul.f32 1.442695, %v1821_v51 }
 0x750   : > { %v3069_v48 = vpop.eup %2465 }
 0x751   : > { %v3071_v24 = vpop.eup %2467  ;;  %v1887_v59 = vsel %vm468_vm1, %v3069_v48, 0.0  ;;  %2477 = vpow2.f32 %v1852_v55 }
 0x752   : > { %1888 = vadd.xlane.f32.xlu0 %v1887_v59  ;;  %v1878_v34 = vsel %vm468_vm1, %v3071_v24, 0.0 }
 0x753   : > { %1879 = vadd.xlane.f32.xlu1 %v1878_v34 }
 0x754   : > { %v3077_v52 = vpop.eup %2469 }
 0x755   : > { %v1881_v60 = vsel %vm468_vm1, %v3077_v52, 0.0 }
 0x756   : > { %1882 = vadd.xlane.f32.xlu0 %v1881_v60  ;;  %v3081_v62 = vpop.eup %2471 }
 0x757   : > { %v1890_v45 = vsel %vm468_vm1, %v3081_v62, 0.0 }
 0x758   : > { %1891 = vadd.xlane.f32.xlu1 %v1890_v45 }
 0x75a   : > { %v3085_v46 = vpop.eup %2473 }
 0x75b   : > { %v3087_v0 = vpop.eup %2475  ;;  %v1893_v63 = vsel %vm468_vm1, %v3085_v46, 0.0 }
 0x75c   : > { %1894 = vadd.xlane.f32.xlu0 %v1893_v63  ;;  %v1896_v57 = vsel %vm468_vm1, %v3087_v0, 0.0 }
 0x75d   : > { %1897 = vadd.xlane.f32.xlu1 %v1896_v57 }
 0x75e   : > { %v3093_v2 = vpop.eup %2477 }
 0x75f   : > { %v1899_v61 = vsel %vm468_vm1, %v3093_v2, 0.0 }
 0x760   : > { %1900 = vadd.xlane.f32.xlu0 %v1899_v61 }
 0x7c6   : > { %v1862_v3 = vpop.xlane.xlu1 %1861 }
 0x7c7   : > { %2479 = vrcp.f32 %v1862_v3 }
 0x7ca   : > { %v1865_v25 = vpop.xlane.xlu0 %1864 }
 0x7cb   : > { %2481 = vrcp.f32 %v1865_v25  ;;  %v1856_v58 = vpop.xlane.xlu1 %1855 }
 0x7cc   : > { %2483 = vrcp.f32 %v1856_v58 }
 0x7ce   : > { %v1859_v4 = vpop.xlane.xlu0 %1858 }
 0x7cf   : > { %2485 = vrcp.f32 %v1859_v4  ;;  %v1874_v5 = vpop.xlane.xlu1 %1873 }
 0x7d0   : > { %2487 = vrcp.f32 %v1874_v5 }
 0x7d3   : > { %v1877_v8 = vpop.xlane.xlu0 %1876 }
 0x7d4   : > { %v2480_v6 = vpop.eup %2479  ;;  %2489 = vrcp.f32 %v1877_v8  ;;  %v1868_v10 = vpop.xlane.xlu1 %1867 }
 0x7d5   : > { %v1920_v11 = vmul.f32 %v2480_v6, %v3024_v9  ;;  %2491 = vrcp.f32 %v1868_v10 }
 0x7d7   : > { %1936 = vst.msk [vmem:[%s3101_s14 + $0x10] sm:$0xff] %vm468_vm1, %v1920_v11  ;;  %v1871_v12 = vpop.xlane.xlu0 %1870 }
 0x7d8   : > { %v2482_v13 = vpop.eup %2481  ;;  %2493 = vrcp.f32 %v1871_v12  ;;  %v1886_v14 = vpop.xlane.xlu1 %1885 }
 0x7d9   : > { %v2484_v15 = vpop.eup %2483  ;;  %v1921_v16 = vmul.f32 %v2482_v13, %v3030_v18  ;;  %2495 = vrcp.f32 %v1886_v14 }
 0x7da   : > { %v1918_v7 = vmul.f32 %v2484_v15, %v3034_v20 }
 0x7db   : > { %1937 = vst.msk [vmem:[%s3101_s14 + $0x18] sm:$0xff] %vm468_vm1, %v1921_v16  ;;  %v1889_v19 = vpop.xlane.xlu0 %1888 }
 0x7dc   : > { %v2486_v21 = vpop.eup %2485  ;;  %1934 = vst.msk [vmem:[%s3101_s14] sm:$0xff] %vm468_vm1, %v1918_v7  ;;  %2497 = vrcp.f32 %v1889_v19  ;;  %v1880_v9 = vpop.xlane.xlu1 %1879 }
 0x7dd   : > { %v2488_v22 = vpop.eup %2487  ;;  %v1919_v23 = vmul.f32 %v2486_v21, %v3040_v28  ;;  %2499 = vrcp.f32 %v1880_v9 }
 0x7de   : > { %v1924_v26 = vmul.f32 %v2488_v22, %v3043_v30 }
 0x7df   : > { %1935 = vst.msk [vmem:[%s3101_s14 + $0x8] sm:$0xff] %vm468_vm1, %v1919_v23  ;;  %v1883_v18 = vpop.xlane.xlu0 %1882 }
 0x7e0   : > { %1940 = vst.msk [vmem:[%s3101_s14 + $0x30] sm:$0xff] %vm468_vm1, %v1924_v26  ;;  %2501 = vrcp.f32 %v1883_v18 }
 0x7e1   : > { %v2490_v20 = vpop.eup %2489  ;;  %v1892_v31 = vpop.xlane.xlu1 %1891 }
 0x7e2   : > { %v2492_v27 = vpop.eup %2491  ;;  %v1925_v29 = vmul.f32 %v2490_v20, %v3050_v37  ;;  %2503 = vrcp.f32 %v1892_v31 }
 0x7e3   : > { %v1922_v32 = vmul.f32 %v2492_v27, %v3052_v1 }
 0x7e4   : > { %1941 = vst.msk [vmem:[%s3101_s14 + $0x38] sm:$0xff] %vm468_vm1, %v1925_v29 }
 0x7e5   : > { %v2494_v28 = vpop.eup %2493  ;;  %1938 = vst.msk [vmem:[%s3101_s14 + $0x20] sm:$0xff] %vm468_vm1, %v1922_v32  ;;  %v1895_v35 = vpop.xlane.xlu0 %1894 }
 0x7e6   : > { %v2496_v30 = vpop.eup %2495  ;;  %v1923_v33 = vmul.f32 %v2494_v28, %v3060_v49  ;;  %2505 = vrcp.f32 %v1895_v35  ;;  %v1898_v37 = vpop.xlane.xlu1 %1897 }
 0x7e7   : > { %v1928_v36 = vmul.f32 %v2496_v30, %v3062_v54  ;;  %2507 = vrcp.f32 %v1898_v37 }
 0x7e8   : > { %1939 = vst.msk [vmem:[%s3101_s14 + $0x28] sm:$0xff] %vm468_vm1, %v1923_v33 }
 0x7e9   : > { %v2498_v38 = vpop.eup %2497  ;;  %1944 = vst.msk [vmem:[%s3101_s14 + $0x50] sm:$0xff] %vm468_vm1, %v1928_v36  ;;  %v1901_v40 = vpop.xlane.xlu0 %1900 }
 0x7ea   : > { %v2500_v1 = vpop.eup %2499  ;;  %v1929_v39 = vmul.f32 %v2498_v38, %v3069_v48  ;;  %2509 = vrcp.f32 %v1901_v40 }
 0x7eb   : > { %v1926_v41 = vmul.f32 %v2500_v1, %v3071_v24 }
 0x7ec   : > { %1945 = vst.msk [vmem:[%s3101_s14 + $0x58] sm:$0xff] %vm468_vm1, %v1929_v39 }
 0x7ed   : > { %v2502_v43 = vpop.eup %2501  ;;  %1942 = vst.msk [vmem:[%s3101_s14 + $0x40] sm:$0xff] %vm468_vm1, %v1926_v41 }
 0x7ee   : > { %v1927_v47 = vmul.f32 %v2502_v43, %v3077_v52 }
 0x7ef   : > { %v2504_v42 = vpop.eup %2503 }
 0x7f0   : > { %1943 = vst.msk [vmem:[%s3101_s14 + $0x48] sm:$0xff] %vm468_vm1, %v1927_v47  ;;  %v1930_v49 = vmul.f32 %v2504_v42, %v3081_v62 }
 0x7f2   : > { %1946 = vst.msk [vmem:[%s3101_s14 + $0x60] sm:$0xff] %vm468_vm1, %v1930_v49 }
 0x7f3   : > { %v2506_v17 = vpop.eup %2505 }
 0x7f4   : > { %v2508_v53 = vpop.eup %2507  ;;  %v1931_v54 = vmul.f32 %v2506_v17, %v3085_v46 }
 0x7f5   : > { %v1932_v56 = vmul.f32 %v2508_v53, %v3087_v0 }
 0x7f6   : > { %1947 = vst.msk [vmem:[%s3101_s14 + $0x68] sm:$0xff] %vm468_vm1, %v1931_v54 }
 0x7f7   : > { %v2510_v50 = vpop.eup %2509  ;;  %1948 = vst.msk [vmem:[%s3101_s14 + $0x70] sm:$0xff] %vm468_vm1, %v1932_v56 }
 0x7f8   : > { %v1933_v51 = vmul.f32 %v2510_v50, %v3093_v2 }
 0x7fa   : > { %1949 = vst.msk [vmem:[%s3101_s14 + $0x78] sm:$0xff] %vm468_vm1, %v1933_v51 }
 0x7fb PF: > { %s21_s17 = sadd.s32 1, %s2517_s17  }
 0x7fc   : > { %p18_p4 = scmp.ge.s32.totalorder %s21_s17, 10  }
 0x7fe   :  { %20 = sbr.rel (!%p18_p4) target bundleno = 1 (0x1), region = 94 }

</bundles_post_ra>
